<compile_context>
chip_gen: v5e
topology: v5e:2x2
jax: 0.10.0
libtpu: 0.0.40
codegen_flags: <defaults>
</compile_context>

<pallas_src>
import jax
import jax.numpy as jnp
from jax.experimental import pallas as pl
from jax.experimental.pallas import tpu as pltpu

# ---------------- problem sizes (small, consistent with the module) ----------------
B = 2          # batch
C0 = 2         # input image channels
CIN = 2 * C0   # channels after self-conditioning concat (reference only)
W = H = D = 8  # spatial (all equal, per docstring)
S = W * H * D  # flattened spatial = 512
E = 32         # embedding size
F_SIN = 16     # sinusoidal feature width
H1 = 32        # noise-MLP hidden
L = 10         # label width
CMID = 8       # model hidden channels
COUT = C0      # model output channels

# ---------------- packed-scalar layout for the SMEM parameter strip ----------------
OFF_W1 = 0                        # (CMID, C0) row-major: m*C0 + c
OFF_B1 = OFF_W1 + CMID * C0       # (CMID,)
OFF_W2 = OFF_B1 + CMID            # (COUT, CMID) row-major: o*CMID + m
OFF_B2 = OFF_W2 + COUT * CMID     # (COUT,)
OFF_SC = OFF_B2 + COUT            # (B, CMID): 1 + FiLM scale, b*CMID + m
OFF_SH = OFF_SC + B * CMID        # (B, CMID): FiLM shift,     b*CMID + m
N_PARAMS = OFF_SH + B * CMID      # 74 scalars total


# ================= Pallas kernel: FiLM-conditioned pointwise conv model ============
def film_model_kernel(params_ref, x_ref, o_ref):
    # params_ref : (N_PARAMS,) f32 in SMEM  (scalar reads)
    # x_ref      : (B*C0,  S) f32 in VMEM   (row layout: [b0c0, b0c1, b1c0, b1c1])
    # o_ref      : (B*COUT, S) f32 in VMEM
    for b in range(B):                                            # static unroll, B=2
        xs = [x_ref[pl.ds(b * C0 + c, 1), :] for c in range(C0)]  # C0 x (1, S)

        hs = []
        for m in range(CMID):
            # pointwise conv 1: scalar-weight x vector FMAs on the VPU
            h = xs[0] * params_ref[OFF_W1 + m * C0 + 0]
            for c in range(1, C0):
                h = h + xs[c] * params_ref[OFF_W1 + m * C0 + c]
            h = h + params_ref[OFF_B1 + m]
            # FiLM: scale already has the +1 folded in by the wrapper
            h = h * params_ref[OFF_SC + b * CMID + m] + params_ref[OFF_SH + b * CMID + m]
            # SiLU (sigmoid goes to the EUP slot)
            h = h * jax.nn.sigmoid(h)
            hs.append(h)

        for o in range(COUT):
            # pointwise conv 2: again scalar x vector FMAs
            acc = hs[0] * params_ref[OFF_W2 + o * CMID + 0]
            for m in range(1, CMID):
                acc = acc + hs[m] * params_ref[OFF_W2 + o * CMID + m]
            o_ref[pl.ds(b * COUT + o, 1), :] = acc + params_ref[OFF_B2 + o]


def run_model(x_flat, params_packed):
    # x_flat: (B*C0, S) f32, params_packed: (N_PARAMS,) f32
    # No grid: one kernel invocation, full slabs resident in VMEM, scalars in SMEM.
    return pl.pallas_call(
        film_model_kernel,
        out_shape=jax.ShapeDtypeStruct((B * COUT, S), jnp.float32),
        in_specs=[
            pl.BlockSpec(memory_space=pltpu.MemorySpace.SMEM),   # packed scalars
            pl.BlockSpec(memory_space=pltpu.MemorySpace.VMEM),   # x slab (8 KiB)
        ],
        out_specs=pl.BlockSpec(memory_space=pltpu.MemorySpace.VMEM),
    )(params_packed, x_flat)


# ============================ glue (plain JAX, fused by jit) ========================
def sinusoid_features(noise):
    # parameter-free sinusoidal embedding of the noise level, (B,) -> (B, F_SIN)
    half = F_SIN // 2
    freqs = jnp.exp(jnp.linspace(jnp.log(1.0), jnp.log(1000.0), half))
    ang = noise[:, None] * freqs[None, :]
    return jnp.concatenate([jnp.sin(ang), jnp.cos(ang)], axis=-1).astype(jnp.float32)


def conditioned_model_forward(x, noise, label, p):
    # x: (B, C0, W, H, D), noise: (B,), label: (B, L)
    # --- conditioning embeddings + FiLM head (few hundred FLOPs; stays in XLA) ---
    feat = sinusoid_features(noise)                                   # (B, F_SIN)
    hn = jax.nn.silu(feat @ p["wn1"] + p["bn1"])                      # (B, H1)
    y = (hn @ p["wn2"] + p["bn2"]) + (label @ p["wl"] + p["bl"])      # concat_label=False -> add
    film = y @ p["wf"] + p["bf"]                                      # (B, 2*CMID)
    scale1p = 1.0 + film[:, :CMID]                                    # fold the +1 here
    shift = film[:, CMID:]                                            # (B, CMID)

    # --- self-conditioning (allow_self_cond=True, x_self_cond=None -> zeros) ---
    # forward() does torch.cat([x, zeros], dim=1), so W1 @ [x ; 0] == W1[:, :C0] @ x.
    w1 = p["w1t"][:, :C0]                                             # (CMID, C0)

    # --- pack all model scalars into one SMEM strip ---
    params_packed = jnp.concatenate([
        w1.reshape(-1),            # OFF_W1
        p["b1"].reshape(-1),       # OFF_B1
        p["w2t"].reshape(-1),      # OFF_W2
        p["b2"].reshape(-1),       # OFF_B2
        scale1p.reshape(-1),       # OFF_SC
        shift.reshape(-1),         # OFF_SH
    ]).astype(jnp.float32)                                            # (N_PARAMS,)

    # --- conditioned model over the volume (single Pallas kernel, hot path) ---
    x_flat = x.reshape(B * C0, S)
    out_flat = run_model(x_flat, params_packed)                       # (B*COUT, S)
    return out_flat.reshape(B, COUT, W, H, D)


def reference_forward(x, noise, label, p):
    # Full-fidelity reference: materializes the concatenated zero channels and uses the
    # un-sliced W1, exactly as the PyTorch module would.  HIGHEST precision so the plain-XLA
    # einsums are true f32, matching the kernel's VPU FMA path (agreement ~1e-6, not bit-exact).
    hi = jax.lax.Precision.HIGHEST
    x_cat = jnp.concatenate([x, jnp.zeros_like(x)], axis=1).reshape(B, CIN, S)
    feat = sinusoid_features(noise)
    hn = jax.nn.silu(feat @ p["wn1"] + p["bn1"])
    y = (hn @ p["wn2"] + p["bn2"]) + (label @ p["wl"] + p["bl"])
    film = y @ p["wf"] + p["bf"]
    h = jnp.einsum("mc,bcs->bms", p["w1t"], x_cat, precision=hi) + p["b1"][None]
    scale = film[:, :CMID][:, :, None]
    shift = film[:, CMID:][:, :, None]
    h = jax.nn.silu(h * (1.0 + scale) + shift)
    out = jnp.einsum("om,bms->bos", p["w2t"], h, precision=hi) + p["b2"][None]
    return out.reshape(B, COUT, W, H, D)


def init_params(key):
    ks = jax.random.split(key, 10)
    f32 = jnp.float32
    return {
        # noise-embedding MLP
        "wn1": 0.2 * jax.random.normal(ks[0], (F_SIN, H1), f32),
        "bn1": 0.1 * jax.random.normal(ks[1], (1, H1), f32),
        "wn2": 0.2 * jax.random.normal(ks[2], (H1, E), f32),
        "bn2": 0.1 * jax.random.normal(ks[3], (1, E), f32),
        # label embedding
        "wl": 0.2 * jax.random.normal(ks[4], (L, E), f32),
        "bl": 0.1 * jax.random.normal(ks[5], (1, E), f32),
        # model: FiLM head + two pointwise convs (stored (Cout, Cin))
        "wf": 0.2 * jax.random.normal(ks[6], (E, 2 * CMID), f32),
        "bf": 0.1 * jax.random.normal(ks[7], (1, 2 * CMID), f32),
        "w1t": 0.3 * jax.random.normal(ks[8], (CMID, CIN), f32),
        "b1": jnp.zeros((CMID, 1), f32),
        "w2t": 0.3 * jax.random.normal(ks[9], (COUT, CMID), f32),
        "b2": jnp.zeros((COUT, 1), f32),
    }


if __name__ == "__main__":
    key = jax.random.PRNGKey(0)
    kx, kn, kl, kp = jax.random.split(key, 4)

    x = jax.random.normal(kx, (B, C0, W, H, D), jnp.float32)
    noise = jax.random.uniform(kn, (B,), jnp.float32)
    label = jax.random.normal(kl, (B, L), jnp.float32)
    params = init_params(kp)

    fwd = jax.jit(conditioned_model_forward)
    out = jax.block_until_ready(fwd(x, noise, label, params))
    ref = jax.block_until_ready(reference_forward(x, noise, label, params))

    assert out.shape == (B, COUT, W, H, D)
    assert jnp.allclose(out, ref, rtol=1e-4, atol=1e-4), "Pallas output mismatch vs reference"
    print("KERNEL_OK")
</pallas_src>

<mosaic_0001>
module attributes {stable_mosaic.version = 11 : i64} {
  func.func @film_model_kernel(%arg0: memref<74xf32, #tpu.memory_space<smem>>, %arg1: memref<4x512xf32, #tpu.memory_space<vmem>>, %arg2: memref<4x512xf32, #tpu.memory_space<vmem>>) attributes {dimension_semantics = [], scalar_prefetch = 0 : i64, scratch_operands = 0 : i64, tpu.core_type = #tpu.core_type<tc>} {
    %c0 = arith.constant 0 : index
    %c0_0 = arith.constant 0 : index
    %0 = vector.load %arg1[%c0, %c0_0] : memref<4x512xf32, #tpu.memory_space<vmem>>, vector<1x512xf32>
    %c1 = arith.constant 1 : index
    %c0_1 = arith.constant 0 : index
    %1 = vector.load %arg1[%c1, %c0_1] : memref<4x512xf32, #tpu.memory_space<vmem>>, vector<1x512xf32>
    %c0_2 = arith.constant 0 : index
    %2 = memref.load %arg0[%c0_2] : memref<74xf32, #tpu.memory_space<smem>>
    %3 = vector.broadcast %2 : f32 to vector<1x512xf32>
    %4 = arith.mulf %0, %3 : vector<1x512xf32>
    %c1_3 = arith.constant 1 : index
    %5 = memref.load %arg0[%c1_3] : memref<74xf32, #tpu.memory_space<smem>>
    %6 = vector.broadcast %5 : f32 to vector<1x512xf32>
    %7 = arith.mulf %1, %6 : vector<1x512xf32>
    %8 = arith.addf %4, %7 : vector<1x512xf32>
    %c16 = arith.constant 16 : index
    %9 = memref.load %arg0[%c16] : memref<74xf32, #tpu.memory_space<smem>>
    %10 = vector.broadcast %9 : f32 to vector<1x512xf32>
    %11 = arith.addf %8, %10 : vector<1x512xf32>
    %c42 = arith.constant 42 : index
    %12 = memref.load %arg0[%c42] : memref<74xf32, #tpu.memory_space<smem>>
    %13 = vector.broadcast %12 : f32 to vector<1x512xf32>
    %14 = arith.mulf %11, %13 : vector<1x512xf32>
    %c58 = arith.constant 58 : index
    %15 = memref.load %arg0[%c58] : memref<74xf32, #tpu.memory_space<smem>>
    %16 = vector.broadcast %15 : f32 to vector<1x512xf32>
    %17 = arith.addf %14, %16 : vector<1x512xf32>
    %18 = arith.negf %17 : vector<1x512xf32>
    %19 = math.exp %18 : vector<1x512xf32>
    %cst = arith.constant 1.000000e+00 : f32
    %20 = vector.broadcast %cst : f32 to vector<1x512xf32>
    %21 = arith.addf %20, %19 : vector<1x512xf32>
    %22 = arith.divf %20, %21 : vector<1x512xf32>
    %23 = arith.mulf %17, %22 : vector<1x512xf32>
    %c2 = arith.constant 2 : index
    %24 = memref.load %arg0[%c2] : memref<74xf32, #tpu.memory_space<smem>>
    %25 = vector.broadcast %24 : f32 to vector<1x512xf32>
    %26 = arith.mulf %0, %25 : vector<1x512xf32>
    %c3 = arith.constant 3 : index
    %27 = memref.load %arg0[%c3] : memref<74xf32, #tpu.memory_space<smem>>
    %28 = vector.broadcast %27 : f32 to vector<1x512xf32>
    %29 = arith.mulf %1, %28 : vector<1x512xf32>
    %30 = arith.addf %26, %29 : vector<1x512xf32>
    %c17 = arith.constant 17 : index
    %31 = memref.load %arg0[%c17] : memref<74xf32, #tpu.memory_space<smem>>
    %32 = vector.broadcast %31 : f32 to vector<1x512xf32>
    %33 = arith.addf %30, %32 : vector<1x512xf32>
    %c43 = arith.constant 43 : index
    %34 = memref.load %arg0[%c43] : memref<74xf32, #tpu.memory_space<smem>>
    %35 = vector.broadcast %34 : f32 to vector<1x512xf32>
    %36 = arith.mulf %33, %35 : vector<1x512xf32>
    %c59 = arith.constant 59 : index
    %37 = memref.load %arg0[%c59] : memref<74xf32, #tpu.memory_space<smem>>
    %38 = vector.broadcast %37 : f32 to vector<1x512xf32>
    %39 = arith.addf %36, %38 : vector<1x512xf32>
    %40 = arith.negf %39 : vector<1x512xf32>
    %41 = math.exp %40 : vector<1x512xf32>
    %cst_4 = arith.constant 1.000000e+00 : f32
    %42 = vector.broadcast %cst_4 : f32 to vector<1x512xf32>
    %43 = arith.addf %42, %41 : vector<1x512xf32>
    %44 = arith.divf %42, %43 : vector<1x512xf32>
    %45 = arith.mulf %39, %44 : vector<1x512xf32>
    %c4 = arith.constant 4 : index
    %46 = memref.load %arg0[%c4] : memref<74xf32, #tpu.memory_space<smem>>
    %47 = vector.broadcast %46 : f32 to vector<1x512xf32>
    %48 = arith.mulf %0, %47 : vector<1x512xf32>
    %c5 = arith.constant 5 : index
    %49 = memref.load %arg0[%c5] : memref<74xf32, #tpu.memory_space<smem>>
    %50 = vector.broadcast %49 : f32 to vector<1x512xf32>
    %51 = arith.mulf %1, %50 : vector<1x512xf32>
    %52 = arith.addf %48, %51 : vector<1x512xf32>
    %c18 = arith.constant 18 : index
    %53 = memref.load %arg0[%c18] : memref<74xf32, #tpu.memory_space<smem>>
    %54 = vector.broadcast %53 : f32 to vector<1x512xf32>
    %55 = arith.addf %52, %54 : vector<1x512xf32>
    %c44 = arith.constant 44 : index
    %56 = memref.load %arg0[%c44] : memref<74xf32, #tpu.memory_space<smem>>
    %57 = vector.broadcast %56 : f32 to vector<1x512xf32>
    %58 = arith.mulf %55, %57 : vector<1x512xf32>
    %c60 = arith.constant 60 : index
    %59 = memref.load %arg0[%c60] : memref<74xf32, #tpu.memory_space<smem>>
    %60 = vector.broadcast %59 : f32 to vector<1x512xf32>
    %61 = arith.addf %58, %60 : vector<1x512xf32>
    %62 = arith.negf %61 : vector<1x512xf32>
    %63 = math.exp %62 : vector<1x512xf32>
    %cst_5 = arith.constant 1.000000e+00 : f32
    %64 = vector.broadcast %cst_5 : f32 to vector<1x512xf32>
    %65 = arith.addf %64, %63 : vector<1x512xf32>
    %66 = arith.divf %64, %65 : vector<1x512xf32>
    %67 = arith.mulf %61, %66 : vector<1x512xf32>
    %c6 = arith.constant 6 : index
    %68 = memref.load %arg0[%c6] : memref<74xf32, #tpu.memory_space<smem>>
    %69 = vector.broadcast %68 : f32 to vector<1x512xf32>
    %70 = arith.mulf %0, %69 : vector<1x512xf32>
    %c7 = arith.constant 7 : index
    %71 = memref.load %arg0[%c7] : memref<74xf32, #tpu.memory_space<smem>>
    %72 = vector.broadcast %71 : f32 to vector<1x512xf32>
    %73 = arith.mulf %1, %72 : vector<1x512xf32>
    %74 = arith.addf %70, %73 : vector<1x512xf32>
    %c19 = arith.constant 19 : index
    %75 = memref.load %arg0[%c19] : memref<74xf32, #tpu.memory_space<smem>>
    %76 = vector.broadcast %75 : f32 to vector<1x512xf32>
    %77 = arith.addf %74, %76 : vector<1x512xf32>
    %c45 = arith.constant 45 : index
    %78 = memref.load %arg0[%c45] : memref<74xf32, #tpu.memory_space<smem>>
    %79 = vector.broadcast %78 : f32 to vector<1x512xf32>
    %80 = arith.mulf %77, %79 : vector<1x512xf32>
    %c61 = arith.constant 61 : index
    %81 = memref.load %arg0[%c61] : memref<74xf32, #tpu.memory_space<smem>>
    %82 = vector.broadcast %81 : f32 to vector<1x512xf32>
    %83 = arith.addf %80, %82 : vector<1x512xf32>
    %84 = arith.negf %83 : vector<1x512xf32>
    %85 = math.exp %84 : vector<1x512xf32>
    %cst_6 = arith.constant 1.000000e+00 : f32
    %86 = vector.broadcast %cst_6 : f32 to vector<1x512xf32>
    %87 = arith.addf %86, %85 : vector<1x512xf32>
    %88 = arith.divf %86, %87 : vector<1x512xf32>
    %89 = arith.mulf %83, %88 : vector<1x512xf32>
    %c8 = arith.constant 8 : index
    %90 = memref.load %arg0[%c8] : memref<74xf32, #tpu.memory_space<smem>>
    %91 = vector.broadcast %90 : f32 to vector<1x512xf32>
    %92 = arith.mulf %0, %91 : vector<1x512xf32>
    %c9 = arith.constant 9 : index
    %93 = memref.load %arg0[%c9] : memref<74xf32, #tpu.memory_space<smem>>
    %94 = vector.broadcast %93 : f32 to vector<1x512xf32>
    %95 = arith.mulf %1, %94 : vector<1x512xf32>
    %96 = arith.addf %92, %95 : vector<1x512xf32>
    %c20 = arith.constant 20 : index
    %97 = memref.load %arg0[%c20] : memref<74xf32, #tpu.memory_space<smem>>
    %98 = vector.broadcast %97 : f32 to vector<1x512xf32>
    %99 = arith.addf %96, %98 : vector<1x512xf32>
    %c46 = arith.constant 46 : index
    %100 = memref.load %arg0[%c46] : memref<74xf32, #tpu.memory_space<smem>>
    %101 = vector.broadcast %100 : f32 to vector<1x512xf32>
    %102 = arith.mulf %99, %101 : vector<1x512xf32>
    %c62 = arith.constant 62 : index
    %103 = memref.load %arg0[%c62] : memref<74xf32, #tpu.memory_space<smem>>
    %104 = vector.broadcast %103 : f32 to vector<1x512xf32>
    %105 = arith.addf %102, %104 : vector<1x512xf32>
    %106 = arith.negf %105 : vector<1x512xf32>
    %107 = math.exp %106 : vector<1x512xf32>
    %cst_7 = arith.constant 1.000000e+00 : f32
    %108 = vector.broadcast %cst_7 : f32 to vector<1x512xf32>
    %109 = arith.addf %108, %107 : vector<1x512xf32>
    %110 = arith.divf %108, %109 : vector<1x512xf32>
    %111 = arith.mulf %105, %110 : vector<1x512xf32>
    %c10 = arith.constant 10 : index
    %112 = memref.load %arg0[%c10] : memref<74xf32, #tpu.memory_space<smem>>
    %113 = vector.broadcast %112 : f32 to vector<1x512xf32>
    %114 = arith.mulf %0, %113 : vector<1x512xf32>
    %c11 = arith.constant 11 : index
    %115 = memref.load %arg0[%c11] : memref<74xf32, #tpu.memory_space<smem>>
    %116 = vector.broadcast %115 : f32 to vector<1x512xf32>
    %117 = arith.mulf %1, %116 : vector<1x512xf32>
    %118 = arith.addf %114, %117 : vector<1x512xf32>
    %c21 = arith.constant 21 : index
    %119 = memref.load %arg0[%c21] : memref<74xf32, #tpu.memory_space<smem>>
    %120 = vector.broadcast %119 : f32 to vector<1x512xf32>
    %121 = arith.addf %118, %120 : vector<1x512xf32>
    %c47 = arith.constant 47 : index
    %122 = memref.load %arg0[%c47] : memref<74xf32, #tpu.memory_space<smem>>
    %123 = vector.broadcast %122 : f32 to vector<1x512xf32>
    %124 = arith.mulf %121, %123 : vector<1x512xf32>
    %c63 = arith.constant 63 : index
    %125 = memref.load %arg0[%c63] : memref<74xf32, #tpu.memory_space<smem>>
    %126 = vector.broadcast %125 : f32 to vector<1x512xf32>
    %127 = arith.addf %124, %126 : vector<1x512xf32>
    %128 = arith.negf %127 : vector<1x512xf32>
    %129 = math.exp %128 : vector<1x512xf32>
    %cst_8 = arith.constant 1.000000e+00 : f32
    %130 = vector.broadcast %cst_8 : f32 to vector<1x512xf32>
    %131 = arith.addf %130, %129 : vector<1x512xf32>
    %132 = arith.divf %130, %131 : vector<1x512xf32>
    %133 = arith.mulf %127, %132 : vector<1x512xf32>
    %c12 = arith.constant 12 : index
    %134 = memref.load %arg0[%c12] : memref<74xf32, #tpu.memory_space<smem>>
    %135 = vector.broadcast %134 : f32 to vector<1x512xf32>
    %136 = arith.mulf %0, %135 : vector<1x512xf32>
    %c13 = arith.constant 13 : index
    %137 = memref.load %arg0[%c13] : memref<74xf32, #tpu.memory_space<smem>>
    %138 = vector.broadcast %137 : f32 to vector<1x512xf32>
    %139 = arith.mulf %1, %138 : vector<1x512xf32>
    %140 = arith.addf %136, %139 : vector<1x512xf32>
    %c22 = arith.constant 22 : index
    %141 = memref.load %arg0[%c22] : memref<74xf32, #tpu.memory_space<smem>>
    %142 = vector.broadcast %141 : f32 to vector<1x512xf32>
    %143 = arith.addf %140, %142 : vector<1x512xf32>
    %c48 = arith.constant 48 : index
    %144 = memref.load %arg0[%c48] : memref<74xf32, #tpu.memory_space<smem>>
    %145 = vector.broadcast %144 : f32 to vector<1x512xf32>
    %146 = arith.mulf %143, %145 : vector<1x512xf32>
    %c64 = arith.constant 64 : index
    %147 = memref.load %arg0[%c64] : memref<74xf32, #tpu.memory_space<smem>>
    %148 = vector.broadcast %147 : f32 to vector<1x512xf32>
    %149 = arith.addf %146, %148 : vector<1x512xf32>
    %150 = arith.negf %149 : vector<1x512xf32>
    %151 = math.exp %150 : vector<1x512xf32>
    %cst_9 = arith.constant 1.000000e+00 : f32
    %152 = vector.broadcast %cst_9 : f32 to vector<1x512xf32>
    %153 = arith.addf %152, %151 : vector<1x512xf32>
    %154 = arith.divf %152, %153 : vector<1x512xf32>
    %155 = arith.mulf %149, %154 : vector<1x512xf32>
    %c14 = arith.constant 14 : index
    %156 = memref.load %arg0[%c14] : memref<74xf32, #tpu.memory_space<smem>>
    %157 = vector.broadcast %156 : f32 to vector<1x512xf32>
    %158 = arith.mulf %0, %157 : vector<1x512xf32>
    %c15 = arith.constant 15 : index
    %159 = memref.load %arg0[%c15] : memref<74xf32, #tpu.memory_space<smem>>
    %160 = vector.broadcast %159 : f32 to vector<1x512xf32>
    %161 = arith.mulf %1, %160 : vector<1x512xf32>
    %162 = arith.addf %158, %161 : vector<1x512xf32>
    %c23 = arith.constant 23 : index
    %163 = memref.load %arg0[%c23] : memref<74xf32, #tpu.memory_space<smem>>
    %164 = vector.broadcast %163 : f32 to vector<1x512xf32>
    %165 = arith.addf %162, %164 : vector<1x512xf32>
    %c49 = arith.constant 49 : index
    %166 = memref.load %arg0[%c49] : memref<74xf32, #tpu.memory_space<smem>>
    %167 = vector.broadcast %166 : f32 to vector<1x512xf32>
    %168 = arith.mulf %165, %167 : vector<1x512xf32>
    %c65 = arith.constant 65 : index
    %169 = memref.load %arg0[%c65] : memref<74xf32, #tpu.memory_space<smem>>
    %170 = vector.broadcast %169 : f32 to vector<1x512xf32>
    %171 = arith.addf %168, %170 : vector<1x512xf32>
    %172 = arith.negf %171 : vector<1x512xf32>
    %173 = math.exp %172 : vector<1x512xf32>
    %cst_10 = arith.constant 1.000000e+00 : f32
    %174 = vector.broadcast %cst_10 : f32 to vector<1x512xf32>
    %175 = arith.addf %174, %173 : vector<1x512xf32>
    %176 = arith.divf %174, %175 : vector<1x512xf32>
    %177 = arith.mulf %171, %176 : vector<1x512xf32>
    %c24 = arith.constant 24 : index
    %178 = memref.load %arg0[%c24] : memref<74xf32, #tpu.memory_space<smem>>
    %179 = vector.broadcast %178 : f32 to vector<1x512xf32>
    %180 = arith.mulf %23, %179 : vector<1x512xf32>
    %c25 = arith.constant 25 : index
    %181 = memref.load %arg0[%c25] : memref<74xf32, #tpu.memory_space<smem>>
    %182 = vector.broadcast %181 : f32 to vector<1x512xf32>
    %183 = arith.mulf %45, %182 : vector<1x512xf32>
    %184 = arith.addf %180, %183 : vector<1x512xf32>
    %c26 = arith.constant 26 : index
    %185 = memref.load %arg0[%c26] : memref<74xf32, #tpu.memory_space<smem>>
    %186 = vector.broadcast %185 : f32 to vector<1x512xf32>
    %187 = arith.mulf %67, %186 : vector<1x512xf32>
    %188 = arith.addf %184, %187 : vector<1x512xf32>
    %c27 = arith.constant 27 : index
    %189 = memref.load %arg0[%c27] : memref<74xf32, #tpu.memory_space<smem>>
    %190 = vector.broadcast %189 : f32 to vector<1x512xf32>
    %191 = arith.mulf %89, %190 : vector<1x512xf32>
    %192 = arith.addf %188, %191 : vector<1x512xf32>
    %c28 = arith.constant 28 : index
    %193 = memref.load %arg0[%c28] : memref<74xf32, #tpu.memory_space<smem>>
    %194 = vector.broadcast %193 : f32 to vector<1x512xf32>
    %195 = arith.mulf %111, %194 : vector<1x512xf32>
    %196 = arith.addf %192, %195 : vector<1x512xf32>
    %c29 = arith.constant 29 : index
    %197 = memref.load %arg0[%c29] : memref<74xf32, #tpu.memory_space<smem>>
    %198 = vector.broadcast %197 : f32 to vector<1x512xf32>
    %199 = arith.mulf %133, %198 : vector<1x512xf32>
    %200 = arith.addf %196, %199 : vector<1x512xf32>
    %c30 = arith.constant 30 : index
    %201 = memref.load %arg0[%c30] : memref<74xf32, #tpu.memory_space<smem>>
    %202 = vector.broadcast %201 : f32 to vector<1x512xf32>
    %203 = arith.mulf %155, %202 : vector<1x512xf32>
    %204 = arith.addf %200, %203 : vector<1x512xf32>
    %c31 = arith.constant 31 : index
    %205 = memref.load %arg0[%c31] : memref<74xf32, #tpu.memory_space<smem>>
    %206 = vector.broadcast %205 : f32 to vector<1x512xf32>
    %207 = arith.mulf %177, %206 : vector<1x512xf32>
    %208 = arith.addf %204, %207 : vector<1x512xf32>
    %c40 = arith.constant 40 : index
    %209 = memref.load %arg0[%c40] : memref<74xf32, #tpu.memory_space<smem>>
    %210 = vector.broadcast %209 : f32 to vector<1x512xf32>
    %211 = arith.addf %208, %210 : vector<1x512xf32>
    %c0_11 = arith.constant 0 : index
    %c0_12 = arith.constant 0 : index
    %212 = vector.load %arg2[%c0_11, %c0_12] : memref<4x512xf32, #tpu.memory_space<vmem>>, vector<1x512xf32>
    tpu.vector_store %arg2[%c0_11, %c0_12], %211 {strides = array<i32>} : memref<4x512xf32, #tpu.memory_space<vmem>>, vector<1x512xf32>,
    %c32 = arith.constant 32 : index
    %213 = memref.load %arg0[%c32] : memref<74xf32, #tpu.memory_space<smem>>
    %214 = vector.broadcast %213 : f32 to vector<1x512xf32>
    %215 = arith.mulf %23, %214 : vector<1x512xf32>
    %c33 = arith.constant 33 : index
    %216 = memref.load %arg0[%c33] : memref<74xf32, #tpu.memory_space<smem>>
    %217 = vector.broadcast %216 : f32 to vector<1x512xf32>
    %218 = arith.mulf %45, %217 : vector<1x512xf32>
    %219 = arith.addf %215, %218 : vector<1x512xf32>
    %c34 = arith.constant 34 : index
    %220 = memref.load %arg0[%c34] : memref<74xf32, #tpu.memory_space<smem>>
    %221 = vector.broadcast %220 : f32 to vector<1x512xf32>
    %222 = arith.mulf %67, %221 : vector<1x512xf32>
    %223 = arith.addf %219, %222 : vector<1x512xf32>
    %c35 = arith.constant 35 : index
    %224 = memref.load %arg0[%c35] : memref<74xf32, #tpu.memory_space<smem>>
    %225 = vector.broadcast %224 : f32 to vector<1x512xf32>
    %226 = arith.mulf %89, %225 : vector<1x512xf32>
    %227 = arith.addf %223, %226 : vector<1x512xf32>
    %c36 = arith.constant 36 : index
    %228 = memref.load %arg0[%c36] : memref<74xf32, #tpu.memory_space<smem>>
    %229 = vector.broadcast %228 : f32 to vector<1x512xf32>
    %230 = arith.mulf %111, %229 : vector<1x512xf32>
    %231 = arith.addf %227, %230 : vector<1x512xf32>
    %c37 = arith.constant 37 : index
    %232 = memref.load %arg0[%c37] : memref<74xf32, #tpu.memory_space<smem>>
    %233 = vector.broadcast %232 : f32 to vector<1x512xf32>
    %234 = arith.mulf %133, %233 : vector<1x512xf32>
    %235 = arith.addf %231, %234 : vector<1x512xf32>
    %c38 = arith.constant 38 : index
    %236 = memref.load %arg0[%c38] : memref<74xf32, #tpu.memory_space<smem>>
    %237 = vector.broadcast %236 : f32 to vector<1x512xf32>
    %238 = arith.mulf %155, %237 : vector<1x512xf32>
    %239 = arith.addf %235, %238 : vector<1x512xf32>
    %c39 = arith.constant 39 : index
    %240 = memref.load %arg0[%c39] : memref<74xf32, #tpu.memory_space<smem>>
    %241 = vector.broadcast %240 : f32 to vector<1x512xf32>
    %242 = arith.mulf %177, %241 : vector<1x512xf32>
    %243 = arith.addf %239, %242 : vector<1x512xf32>
    %c41 = arith.constant 41 : index
    %244 = memref.load %arg0[%c41] : memref<74xf32, #tpu.memory_space<smem>>
    %245 = vector.broadcast %244 : f32 to vector<1x512xf32>
    %246 = arith.addf %243, %245 : vector<1x512xf32>
    %c1_13 = arith.constant 1 : index
    %c0_14 = arith.constant 0 : index
    %247 = vector.load %arg2[%c1_13, %c0_14] : memref<4x512xf32, #tpu.memory_space<vmem>>, vector<1x512xf32>
    tpu.vector_store %arg2[%c1_13, %c0_14], %246 {strides = array<i32>} : memref<4x512xf32, #tpu.memory_space<vmem>>, vector<1x512xf32>,
    %c2_15 = arith.constant 2 : index
    %c0_16 = arith.constant 0 : index
    %248 = vector.load %arg1[%c2_15, %c0_16] : memref<4x512xf32, #tpu.memory_space<vmem>>, vector<1x512xf32>
    %c3_17 = arith.constant 3 : index
    %c0_18 = arith.constant 0 : index
    %249 = vector.load %arg1[%c3_17, %c0_18] : memref<4x512xf32, #tpu.memory_space<vmem>>, vector<1x512xf32>
    %c0_19 = arith.constant 0 : index
    %250 = memref.load %arg0[%c0_19] : memref<74xf32, #tpu.memory_space<smem>>
    %251 = vector.broadcast %250 : f32 to vector<1x512xf32>
    %252 = arith.mulf %248, %251 : vector<1x512xf32>
    %c1_20 = arith.constant 1 : index
    %253 = memref.load %arg0[%c1_20] : memref<74xf32, #tpu.memory_space<smem>>
    %254 = vector.broadcast %253 : f32 to vector<1x512xf32>
    %255 = arith.mulf %249, %254 : vector<1x512xf32>
    %256 = arith.addf %252, %255 : vector<1x512xf32>
    %c16_21 = arith.constant 16 : index
    %257 = memref.load %arg0[%c16_21] : memref<74xf32, #tpu.memory_space<smem>>
    %258 = vector.broadcast %257 : f32 to vector<1x512xf32>
    %259 = arith.addf %256, %258 : vector<1x512xf32>
    %c50 = arith.constant 50 : index
    %260 = memref.load %arg0[%c50] : memref<74xf32, #tpu.memory_space<smem>>
    %261 = vector.broadcast %260 : f32 to vector<1x512xf32>
    %262 = arith.mulf %259, %261 : vector<1x512xf32>
    %c66 = arith.constant 66 : index
    %263 = memref.load %arg0[%c66] : memref<74xf32, #tpu.memory_space<smem>>
    %264 = vector.broadcast %263 : f32 to vector<1x512xf32>
    %265 = arith.addf %262, %264 : vector<1x512xf32>
    %266 = arith.negf %265 : vector<1x512xf32>
    %267 = math.exp %266 : vector<1x512xf32>
    %cst_22 = arith.constant 1.000000e+00 : f32
    %268 = vector.broadcast %cst_22 : f32 to vector<1x512xf32>
    %269 = arith.addf %268, %267 : vector<1x512xf32>
    %270 = arith.divf %268, %269 : vector<1x512xf32>
    %271 = arith.mulf %265, %270 : vector<1x512xf32>
    %c2_23 = arith.constant 2 : index
    %272 = memref.load %arg0[%c2_23] : memref<74xf32, #tpu.memory_space<smem>>
    %273 = vector.broadcast %272 : f32 to vector<1x512xf32>
    %274 = arith.mulf %248, %273 : vector<1x512xf32>
    %c3_24 = arith.constant 3 : index
    %275 = memref.load %arg0[%c3_24] : memref<74xf32, #tpu.memory_space<smem>>
    %276 = vector.broadcast %275 : f32 to vector<1x512xf32>
    %277 = arith.mulf %249, %276 : vector<1x512xf32>
    %278 = arith.addf %274, %277 : vector<1x512xf32>
    %c17_25 = arith.constant 17 : index
    %279 = memref.load %arg0[%c17_25] : memref<74xf32, #tpu.memory_space<smem>>
    %280 = vector.broadcast %279 : f32 to vector<1x512xf32>
    %281 = arith.addf %278, %280 : vector<1x512xf32>
    %c51 = arith.constant 51 : index
    %282 = memref.load %arg0[%c51] : memref<74xf32, #tpu.memory_space<smem>>
    %283 = vector.broadcast %282 : f32 to vector<1x512xf32>
    %284 = arith.mulf %281, %283 : vector<1x512xf32>
    %c67 = arith.constant 67 : index
    %285 = memref.load %arg0[%c67] : memref<74xf32, #tpu.memory_space<smem>>
    %286 = vector.broadcast %285 : f32 to vector<1x512xf32>
    %287 = arith.addf %284, %286 : vector<1x512xf32>
    %288 = arith.negf %287 : vector<1x512xf32>
    %289 = math.exp %288 : vector<1x512xf32>
    %cst_26 = arith.constant 1.000000e+00 : f32
    %290 = vector.broadcast %cst_26 : f32 to vector<1x512xf32>
    %291 = arith.addf %290, %289 : vector<1x512xf32>
    %292 = arith.divf %290, %291 : vector<1x512xf32>
    %293 = arith.mulf %287, %292 : vector<1x512xf32>
    %c4_27 = arith.constant 4 : index
    %294 = memref.load %arg0[%c4_27] : memref<74xf32, #tpu.memory_space<smem>>
    %295 = vector.broadcast %294 : f32 to vector<1x512xf32>
    %296 = arith.mulf %248, %295 : vector<1x512xf32>
    %c5_28 = arith.constant 5 : index
    %297 = memref.load %arg0[%c5_28] : memref<74xf32, #tpu.memory_space<smem>>
    %298 = vector.broadcast %297 : f32 to vector<1x512xf32>
    %299 = arith.mulf %249, %298 : vector<1x512xf32>
    %300 = arith.addf %296, %299 : vector<1x512xf32>
    %c18_29 = arith.constant 18 : index
    %301 = memref.load %arg0[%c18_29] : memref<74xf32, #tpu.memory_space<smem>>
    %302 = vector.broadcast %301 : f32 to vector<1x512xf32>
    %303 = arith.addf %300, %302 : vector<1x512xf32>
    %c52 = arith.constant 52 : index
    %304 = memref.load %arg0[%c52] : memref<74xf32, #tpu.memory_space<smem>>
    %305 = vector.broadcast %304 : f32 to vector<1x512xf32>
    %306 = arith.mulf %303, %305 : vector<1x512xf32>
    %c68 = arith.constant 68 : index
    %307 = memref.load %arg0[%c68] : memref<74xf32, #tpu.memory_space<smem>>
    %308 = vector.broadcast %307 : f32 to vector<1x512xf32>
    %309 = arith.addf %306, %308 : vector<1x512xf32>
    %310 = arith.negf %309 : vector<1x512xf32>
    %311 = math.exp %310 : vector<1x512xf32>
    %cst_30 = arith.constant 1.000000e+00 : f32
    %312 = vector.broadcast %cst_30 : f32 to vector<1x512xf32>
    %313 = arith.addf %312, %311 : vector<1x512xf32>
    %314 = arith.divf %312, %313 : vector<1x512xf32>
    %315 = arith.mulf %309, %314 : vector<1x512xf32>
    %c6_31 = arith.constant 6 : index
    %316 = memref.load %arg0[%c6_31] : memref<74xf32, #tpu.memory_space<smem>>
    %317 = vector.broadcast %316 : f32 to vector<1x512xf32>
    %318 = arith.mulf %248, %317 : vector<1x512xf32>
    %c7_32 = arith.constant 7 : index
    %319 = memref.load %arg0[%c7_32] : memref<74xf32, #tpu.memory_space<smem>>
    %320 = vector.broadcast %319 : f32 to vector<1x512xf32>
    %321 = arith.mulf %249, %320 : vector<1x512xf32>
    %322 = arith.addf %318, %321 : vector<1x512xf32>
    %c19_33 = arith.constant 19 : index
    %323 = memref.load %arg0[%c19_33] : memref<74xf32, #tpu.memory_space<smem>>
    %324 = vector.broadcast %323 : f32 to vector<1x512xf32>
    %325 = arith.addf %322, %324 : vector<1x512xf32>
    %c53 = arith.constant 53 : index
    %326 = memref.load %arg0[%c53] : memref<74xf32, #tpu.memory_space<smem>>
    %327 = vector.broadcast %326 : f32 to vector<1x512xf32>
    %328 = arith.mulf %325, %327 : vector<1x512xf32>
    %c69 = arith.constant 69 : index
    %329 = memref.load %arg0[%c69] : memref<74xf32, #tpu.memory_space<smem>>
    %330 = vector.broadcast %329 : f32 to vector<1x512xf32>
    %331 = arith.addf %328, %330 : vector<1x512xf32>
    %332 = arith.negf %331 : vector<1x512xf32>
    %333 = math.exp %332 : vector<1x512xf32>
    %cst_34 = arith.constant 1.000000e+00 : f32
    %334 = vector.broadcast %cst_34 : f32 to vector<1x512xf32>
    %335 = arith.addf %334, %333 : vector<1x512xf32>
    %336 = arith.divf %334, %335 : vector<1x512xf32>
    %337 = arith.mulf %331, %336 : vector<1x512xf32>
    %c8_35 = arith.constant 8 : index
    %338 = memref.load %arg0[%c8_35] : memref<74xf32, #tpu.memory_space<smem>>
    %339 = vector.broadcast %338 : f32 to vector<1x512xf32>
    %340 = arith.mulf %248, %339 : vector<1x512xf32>
    %c9_36 = arith.constant 9 : index
    %341 = memref.load %arg0[%c9_36] : memref<74xf32, #tpu.memory_space<smem>>
    %342 = vector.broadcast %341 : f32 to vector<1x512xf32>
    %343 = arith.mulf %249, %342 : vector<1x512xf32>
    %344 = arith.addf %340, %343 : vector<1x512xf32>
    %c20_37 = arith.constant 20 : index
    %345 = memref.load %arg0[%c20_37] : memref<74xf32, #tpu.memory_space<smem>>
    %346 = vector.broadcast %345 : f32 to vector<1x512xf32>
    %347 = arith.addf %344, %346 : vector<1x512xf32>
    %c54 = arith.constant 54 : index
    %348 = memref.load %arg0[%c54] : memref<74xf32, #tpu.memory_space<smem>>
    %349 = vector.broadcast %348 : f32 to vector<1x512xf32>
    %350 = arith.mulf %347, %349 : vector<1x512xf32>
    %c70 = arith.constant 70 : index
    %351 = memref.load %arg0[%c70] : memref<74xf32, #tpu.memory_space<smem>>
    %352 = vector.broadcast %351 : f32 to vector<1x512xf32>
    %353 = arith.addf %350, %352 : vector<1x512xf32>
    %354 = arith.negf %353 : vector<1x512xf32>
    %355 = math.exp %354 : vector<1x512xf32>
    %cst_38 = arith.constant 1.000000e+00 : f32
    %356 = vector.broadcast %cst_38 : f32 to vector<1x512xf32>
    %357 = arith.addf %356, %355 : vector<1x512xf32>
    %358 = arith.divf %356, %357 : vector<1x512xf32>
    %359 = arith.mulf %353, %358 : vector<1x512xf32>
    %c10_39 = arith.constant 10 : index
    %360 = memref.load %arg0[%c10_39] : memref<74xf32, #tpu.memory_space<smem>>
    %361 = vector.broadcast %360 : f32 to vector<1x512xf32>
    %362 = arith.mulf %248, %361 : vector<1x512xf32>
    %c11_40 = arith.constant 11 : index
    %363 = memref.load %arg0[%c11_40] : memref<74xf32, #tpu.memory_space<smem>>
    %364 = vector.broadcast %363 : f32 to vector<1x512xf32>
    %365 = arith.mulf %249, %364 : vector<1x512xf32>
    %366 = arith.addf %362, %365 : vector<1x512xf32>
    %c21_41 = arith.constant 21 : index
    %367 = memref.load %arg0[%c21_41] : memref<74xf32, #tpu.memory_space<smem>>
    %368 = vector.broadcast %367 : f32 to vector<1x512xf32>
    %369 = arith.addf %366, %368 : vector<1x512xf32>
    %c55 = arith.constant 55 : index
    %370 = memref.load %arg0[%c55] : memref<74xf32, #tpu.memory_space<smem>>
    %371 = vector.broadcast %370 : f32 to vector<1x512xf32>
    %372 = arith.mulf %369, %371 : vector<1x512xf32>
    %c71 = arith.constant 71 : index
    %373 = memref.load %arg0[%c71] : memref<74xf32, #tpu.memory_space<smem>>
    %374 = vector.broadcast %373 : f32 to vector<1x512xf32>
    %375 = arith.addf %372, %374 : vector<1x512xf32>
    %376 = arith.negf %375 : vector<1x512xf32>
    %377 = math.exp %376 : vector<1x512xf32>
    %cst_42 = arith.constant 1.000000e+00 : f32
    %378 = vector.broadcast %cst_42 : f32 to vector<1x512xf32>
    %379 = arith.addf %378, %377 : vector<1x512xf32>
    %380 = arith.divf %378, %379 : vector<1x512xf32>
    %381 = arith.mulf %375, %380 : vector<1x512xf32>
    %c12_43 = arith.constant 12 : index
    %382 = memref.load %arg0[%c12_43] : memref<74xf32, #tpu.memory_space<smem>>
    %383 = vector.broadcast %382 : f32 to vector<1x512xf32>
    %384 = arith.mulf %248, %383 : vector<1x512xf32>
    %c13_44 = arith.constant 13 : index
    %385 = memref.load %arg0[%c13_44] : memref<74xf32, #tpu.memory_space<smem>>
    %386 = vector.broadcast %385 : f32 to vector<1x512xf32>
    %387 = arith.mulf %249, %386 : vector<1x512xf32>
    %388 = arith.addf %384, %387 : vector<1x512xf32>
    %c22_45 = arith.constant 22 : index
    %389 = memref.load %arg0[%c22_45] : memref<74xf32, #tpu.memory_space<smem>>
    %390 = vector.broadcast %389 : f32 to vector<1x512xf32>
    %391 = arith.addf %388, %390 : vector<1x512xf32>
    %c56 = arith.constant 56 : index
    %392 = memref.load %arg0[%c56] : memref<74xf32, #tpu.memory_space<smem>>
    %393 = vector.broadcast %392 : f32 to vector<1x512xf32>
    %394 = arith.mulf %391, %393 : vector<1x512xf32>
    %c72 = arith.constant 72 : index
    %395 = memref.load %arg0[%c72] : memref<74xf32, #tpu.memory_space<smem>>
    %396 = vector.broadcast %395 : f32 to vector<1x512xf32>
    %397 = arith.addf %394, %396 : vector<1x512xf32>
    %398 = arith.negf %397 : vector<1x512xf32>
    %399 = math.exp %398 : vector<1x512xf32>
    %cst_46 = arith.constant 1.000000e+00 : f32
    %400 = vector.broadcast %cst_46 : f32 to vector<1x512xf32>
    %401 = arith.addf %400, %399 : vector<1x512xf32>
    %402 = arith.divf %400, %401 : vector<1x512xf32>
    %403 = arith.mulf %397, %402 : vector<1x512xf32>
    %c14_47 = arith.constant 14 : index
    %404 = memref.load %arg0[%c14_47] : memref<74xf32, #tpu.memory_space<smem>>
    %405 = vector.broadcast %404 : f32 to vector<1x512xf32>
    %406 = arith.mulf %248, %405 : vector<1x512xf32>
    %c15_48 = arith.constant 15 : index
    %407 = memref.load %arg0[%c15_48] : memref<74xf32, #tpu.memory_space<smem>>
    %408 = vector.broadcast %407 : f32 to vector<1x512xf32>
    %409 = arith.mulf %249, %408 : vector<1x512xf32>
    %410 = arith.addf %406, %409 : vector<1x512xf32>
    %c23_49 = arith.constant 23 : index
    %411 = memref.load %arg0[%c23_49] : memref<74xf32, #tpu.memory_space<smem>>
    %412 = vector.broadcast %411 : f32 to vector<1x512xf32>
    %413 = arith.addf %410, %412 : vector<1x512xf32>
    %c57 = arith.constant 57 : index
    %414 = memref.load %arg0[%c57] : memref<74xf32, #tpu.memory_space<smem>>
    %415 = vector.broadcast %414 : f32 to vector<1x512xf32>
    %416 = arith.mulf %413, %415 : vector<1x512xf32>
    %c73 = arith.constant 73 : index
    %417 = memref.load %arg0[%c73] : memref<74xf32, #tpu.memory_space<smem>>
    %418 = vector.broadcast %417 : f32 to vector<1x512xf32>
    %419 = arith.addf %416, %418 : vector<1x512xf32>
    %420 = arith.negf %419 : vector<1x512xf32>
    %421 = math.exp %420 : vector<1x512xf32>
    %cst_50 = arith.constant 1.000000e+00 : f32
    %422 = vector.broadcast %cst_50 : f32 to vector<1x512xf32>
    %423 = arith.addf %422, %421 : vector<1x512xf32>
    %424 = arith.divf %422, %423 : vector<1x512xf32>
    %425 = arith.mulf %419, %424 : vector<1x512xf32>
    %c24_51 = arith.constant 24 : index
    %426 = memref.load %arg0[%c24_51] : memref<74xf32, #tpu.memory_space<smem>>
    %427 = vector.broadcast %426 : f32 to vector<1x512xf32>
    %428 = arith.mulf %271, %427 : vector<1x512xf32>
    %c25_52 = arith.constant 25 : index
    %429 = memref.load %arg0[%c25_52] : memref<74xf32, #tpu.memory_space<smem>>
    %430 = vector.broadcast %429 : f32 to vector<1x512xf32>
    %431 = arith.mulf %293, %430 : vector<1x512xf32>
    %432 = arith.addf %428, %431 : vector<1x512xf32>
    %c26_53 = arith.constant 26 : index
    %433 = memref.load %arg0[%c26_53] : memref<74xf32, #tpu.memory_space<smem>>
    %434 = vector.broadcast %433 : f32 to vector<1x512xf32>
    %435 = arith.mulf %315, %434 : vector<1x512xf32>
    %436 = arith.addf %432, %435 : vector<1x512xf32>
    %c27_54 = arith.constant 27 : index
    %437 = memref.load %arg0[%c27_54] : memref<74xf32, #tpu.memory_space<smem>>
    %438 = vector.broadcast %437 : f32 to vector<1x512xf32>
    %439 = arith.mulf %337, %438 : vector<1x512xf32>
    %440 = arith.addf %436, %439 : vector<1x512xf32>
    %c28_55 = arith.constant 28 : index
    %441 = memref.load %arg0[%c28_55] : memref<74xf32, #tpu.memory_space<smem>>
    %442 = vector.broadcast %441 : f32 to vector<1x512xf32>
    %443 = arith.mulf %359, %442 : vector<1x512xf32>
    %444 = arith.addf %440, %443 : vector<1x512xf32>
    %c29_56 = arith.constant 29 : index
    %445 = memref.load %arg0[%c29_56] : memref<74xf32, #tpu.memory_space<smem>>
    %446 = vector.broadcast %445 : f32 to vector<1x512xf32>
    %447 = arith.mulf %381, %446 : vector<1x512xf32>
    %448 = arith.addf %444, %447 : vector<1x512xf32>
    %c30_57 = arith.constant 30 : index
    %449 = memref.load %arg0[%c30_57] : memref<74xf32, #tpu.memory_space<smem>>
    %450 = vector.broadcast %449 : f32 to vector<1x512xf32>
    %451 = arith.mulf %403, %450 : vector<1x512xf32>
    %452 = arith.addf %448, %451 : vector<1x512xf32>
    %c31_58 = arith.constant 31 : index
    %453 = memref.load %arg0[%c31_58] : memref<74xf32, #tpu.memory_space<smem>>
    %454 = vector.broadcast %453 : f32 to vector<1x512xf32>
    %455 = arith.mulf %425, %454 : vector<1x512xf32>
    %456 = arith.addf %452, %455 : vector<1x512xf32>
    %c40_59 = arith.constant 40 : index
    %457 = memref.load %arg0[%c40_59] : memref<74xf32, #tpu.memory_space<smem>>
    %458 = vector.broadcast %457 : f32 to vector<1x512xf32>
    %459 = arith.addf %456, %458 : vector<1x512xf32>
    %c2_60 = arith.constant 2 : index
    %c0_61 = arith.constant 0 : index
    %460 = vector.load %arg2[%c2_60, %c0_61] : memref<4x512xf32, #tpu.memory_space<vmem>>, vector<1x512xf32>
    tpu.vector_store %arg2[%c2_60, %c0_61], %459 {strides = array<i32>} : memref<4x512xf32, #tpu.memory_space<vmem>>, vector<1x512xf32>,
    %c32_62 = arith.constant 32 : index
    %461 = memref.load %arg0[%c32_62] : memref<74xf32, #tpu.memory_space<smem>>
    %462 = vector.broadcast %461 : f32 to vector<1x512xf32>
    %463 = arith.mulf %271, %462 : vector<1x512xf32>
    %c33_63 = arith.constant 33 : index
    %464 = memref.load %arg0[%c33_63] : memref<74xf32, #tpu.memory_space<smem>>
    %465 = vector.broadcast %464 : f32 to vector<1x512xf32>
    %466 = arith.mulf %293, %465 : vector<1x512xf32>
    %467 = arith.addf %463, %466 : vector<1x512xf32>
    %c34_64 = arith.constant 34 : index
    %468 = memref.load %arg0[%c34_64] : memref<74xf32, #tpu.memory_space<smem>>
    %469 = vector.broadcast %468 : f32 to vector<1x512xf32>
    %470 = arith.mulf %315, %469 : vector<1x512xf32>
    %471 = arith.addf %467, %470 : vector<1x512xf32>
    %c35_65 = arith.constant 35 : index
    %472 = memref.load %arg0[%c35_65] : memref<74xf32, #tpu.memory_space<smem>>
    %473 = vector.broadcast %472 : f32 to vector<1x512xf32>
    %474 = arith.mulf %337, %473 : vector<1x512xf32>
    %475 = arith.addf %471, %474 : vector<1x512xf32>
    %c36_66 = arith.constant 36 : index
    %476 = memref.load %arg0[%c36_66] : memref<74xf32, #tpu.memory_space<smem>>
    %477 = vector.broadcast %476 : f32 to vector<1x512xf32>
    %478 = arith.mulf %359, %477 : vector<1x512xf32>
    %479 = arith.addf %475, %478 : vector<1x512xf32>
    %c37_67 = arith.constant 37 : index
    %480 = memref.load %arg0[%c37_67] : memref<74xf32, #tpu.memory_space<smem>>
    %481 = vector.broadcast %480 : f32 to vector<1x512xf32>
    %482 = arith.mulf %381, %481 : vector<1x512xf32>
    %483 = arith.addf %479, %482 : vector<1x512xf32>
    %c38_68 = arith.constant 38 : index
    %484 = memref.load %arg0[%c38_68] : memref<74xf32, #tpu.memory_space<smem>>
    %485 = vector.broadcast %484 : f32 to vector<1x512xf32>
    %486 = arith.mulf %403, %485 : vector<1x512xf32>
    %487 = arith.addf %483, %486 : vector<1x512xf32>
    %c39_69 = arith.constant 39 : index
    %488 = memref.load %arg0[%c39_69] : memref<74xf32, #tpu.memory_space<smem>>
    %489 = vector.broadcast %488 : f32 to vector<1x512xf32>
    %490 = arith.mulf %425, %489 : vector<1x512xf32>
    %491 = arith.addf %487, %490 : vector<1x512xf32>
    %c41_70 = arith.constant 41 : index
    %492 = memref.load %arg0[%c41_70] : memref<74xf32, #tpu.memory_space<smem>>
    %493 = vector.broadcast %492 : f32 to vector<1x512xf32>
    %494 = arith.addf %491, %493 : vector<1x512xf32>
    %c3_71 = arith.constant 3 : index
    %c0_72 = arith.constant 0 : index
    %495 = vector.load %arg2[%c3_71, %c0_72] : memref<4x512xf32, #tpu.memory_space<vmem>>, vector<1x512xf32>
    tpu.vector_store %arg2[%c3_71, %c0_72], %494 {strides = array<i32>} : memref<4x512xf32, #tpu.memory_space<vmem>>, vector<1x512xf32>,
    return
  }
}

</mosaic_0001>

<bundles_post_ra>
// kernel: conditioned_model_forward.1
= control target key start
LH: loop header
LB: loop body
LE: loop exit
PB: predicated region body
PF: predicated region fallthrough
CT: control target
= control target key end

     0   :  { %s1818_s0 = inlined_call_operand.vmem [shape: f32[74], index: 0, kind: input, shape index: {}]   ;;  %s1819_s1 = inlined_call_operand.vmem [shape: f32[4,512], index: 1, kind: input, shape index: {}]   ;;  %s1820_s2 = inlined_call_operand.vmem [shape: f32[4,512], index: 2, kind: output, shape index: {}]  }
   0x1   :  { %1838 = sst [smem:[#allocation18_spill]] %s1820_s2 }
   0x2   :  { %7 = vsyncpa [#allocation3], 0  ;;  %s13_s11 = sshll.u32 %s1818_s0, 4  ;;  %s974_s12 = smov [#allocation2]   ;;  %s14_s11 = int_to_ptr.vmem [resolvable:$true] %s13_s11 }
   0x3   :  { %16 = dma.vmem_to_smem %s14_s11, 16, %s974_s12, [#allocation3]  }
   0x4   :  { %972 = dma.done.wait [#allocation3], 16  }
   0x5   :  { %973 = vsyncadd [#allocation3], 4294967280 }
   0x6   :  { %23 = sfence }
   0x7   :  { %s993_s13 = sld [smem:[#allocation2]]  ;;  %v1002_v0 = vld [vmem:[%s1819_s1] ss:$4 sm:$0xf] }
   0x8   :  { %s995_s14 = sld [smem:[#allocation2 + $0x1]]  ;;  %v1007_v1 = vld [vmem:[%s1819_s1 + $0x1] ss:$4 sm:$0xf] }
   0x9   :  { %s997_s15 = sld [smem:[#allocation2 + $0x10]]  ;;  %v1086_v33 = vld [vmem:[%s1819_s1 + $0x2] ss:$4 sm:$0xf] }
   0xa   :  { %s762_s16 = sld [smem:[#allocation2 + $0x2a]]  ;;  %v1099_v37 = vld [vmem:[%s1819_s1 + $0x3] ss:$4 sm:$0xf] }
   0xb   :  { %s763_s18 = sld [smem:[#allocation2 + $0x3a]] }
   0xc   :  { %s1009_s21 = sld [smem:[#allocation2 + $0x2]] }
   0xd   :  { %v28_v2 = vstv %s993_s13  ;;  %s1012_s22 = sld [smem:[#allocation2 + $0x3]] }
   0xe   :  { %v29_v3 = vmul.f32 %v28_v2, %v1002_v0  ;;  %v31_v4 = vstv %s995_s14  ;;  %s1018_s23 = sld [smem:[#allocation2 + $0x11]]  ;;  %v396_v44 = vmul.f32 %v1086_v33, %v28_v2 }
   0xf   :  { %v32_v5 = vmul.f32 %v1007_v1, %v31_v4  ;;  %s1023_s24 = sld [smem:[#allocation2 + $0x2b]]  ;;  %v35_v6 = vstv %s997_s15  ;;  %v399_v49 = vmul.f32 %v1099_v37, %v31_v4 }
  0x10   :  { %s1026_s25 = sld [smem:[#allocation2 + $0x3b]]  ;;  %v38_v8 = vstv %s762_s16 }
  0x11   :  { %v33_v7 = vadd.f32 %v32_v5, %v29_v3  ;;  %s1028_s26 = sld [smem:[#allocation2 + $0x4]]  ;;  %v41_v13 = vstv %s763_s18  ;;  %v400_v60 = vadd.f32 %v399_v49, %v396_v44 }
  0x12   :  { %v64_v9 = vstv %s1009_s21  ;;  %s1031_s27 = sld [smem:[#allocation2 + $0x5]] }
  0x13   :  { %v36_v10 = vadd.f32 %v35_v6, %v33_v7  ;;  %v65_v11 = vmul.f32 %v64_v9, %v1002_v0  ;;  %v67_v12 = vstv %s1012_s22  ;;  %s1039_s28 = sld [smem:[#allocation2 + $0x12]] }
  0x14   :  { %v68_v14 = vmul.f32 %v1007_v1, %v67_v12  ;;  %s1044_s29 = sld [smem:[#allocation2 + $0x2c]]  ;;  %v71_v16 = vstv %s1018_s23 }
  0x15   :  { %v39_v15 = vmul.f32 %v38_v8, %v36_v10  ;;  %s1047_s30 = sld [smem:[#allocation2 + $0x3c]]  ;;  %v74_v19 = vstv %s1023_s24 }
  0x16   :  { %v69_v17 = vadd.f32 %v68_v14, %v65_v11  ;;  %s1049_s3 = sld [smem:[#allocation2 + $0x6]]  ;;  %v77_v25 = vstv %s1026_s25 }
  0x17   :  { %v1051_v18 = vadd.f32 %v41_v13, %v39_v15  ;;  %v100_v20 = vstv %s1028_s26  ;;  %s1055_s4 = sld [smem:[#allocation2 + $0x7]]  ;;  %v1168_v13 = vadd.f32 %v400_v60, %v35_v6 }
  0x18   :  { %v72_v21 = vadd.f32 %v71_v16, %v69_v17  ;;  %v101_v22 = vmul.f32 %v100_v20, %v1002_v0  ;;  %v103_v23 = vstv %s1031_s27  ;;  %s1063_s5 = sld [smem:[#allocation2 + $0x13]] }
  0x19   :  { %v764_v24 = vmul.f32 -1.442695, %v1051_v18  ;;  %v104_v26 = vmul.f32 %v1007_v1, %v103_v23  ;;  %s1070_s6 = sld [smem:[#allocation2 + $0x2d]]  ;;  %v107_v28 = vstv %s1039_s28 }
  0x1a   :  { %v75_v27 = vmul.f32 %v74_v19, %v72_v21  ;;  %s1073_s7 = sld [smem:[#allocation2 + $0x3d]]  ;;  %v110_v31 = vstv %s1044_s29 }
  0x1b   :  { %896 = vpow2.f32 %v764_v24  ;;  %v105_v29 = vadd.f32 %v104_v26, %v101_v22  ;;  %s1075_s8 = sld [smem:[#allocation2 + $0x8]]  ;;  %v113_v39 = vstv %s1047_s30 }
  0x1c   :  { %v1077_v30 = vadd.f32 %v77_v25, %v75_v27  ;;  %v136_v32 = vstv %s1049_s3  ;;  %s1081_s9 = sld [smem:[#allocation2 + $0x9]] }
  0x1d   :  { %v108_v34 = vadd.f32 %v107_v28, %v105_v29  ;;  %v137_v35 = vmul.f32 %v136_v32, %v1002_v0  ;;  %v139_v36 = vstv %s1055_s4  ;;  %s1094_s12 = sld [smem:[#allocation2 + $0x14]] }
  0x1e   :  { %v770_v38 = vmul.f32 -1.442695, %v1077_v30  ;;  %v140_v40 = vmul.f32 %v1007_v1, %v139_v36  ;;  %s1106_s0 = sld [smem:[#allocation2 + $0x2e]]  ;;  %v143_v42 = vstv %s1063_s5 }
  0x1f   :  { %v111_v41 = vmul.f32 %v110_v31, %v108_v34  ;;  %s1109_s18 = sld [smem:[#allocation2 + $0x3e]]  ;;  %v146_v47 = vstv %s1070_s6 }
  0x20   :  { %898 = vpow2.f32 %v770_v38  ;;  %v141_v43 = vadd.f32 %v140_v40, %v137_v35  ;;  %s1111_s1 = sld [smem:[#allocation2 + $0xa]]  ;;  %v149_v56 = vstv %s1073_s7 }
  0x21   :  { %v897_v45 = vpop.eup %896  ;;  %v1116_v46 = vadd.f32 %v113_v39, %v111_v41  ;;  %v172_v48 = vstv %s1075_s8  ;;  %s1120_s19 = sld [smem:[#allocation2 + $0xb]] }
  0x22   :  { %v1125_v50 = vadd.f32 1.0, %v897_v45  ;;  %v144_v51 = vadd.f32 %v143_v42, %v141_v43  ;;  %v173_v52 = vmul.f32 %v172_v48, %v1002_v0  ;;  %v175_v53 = vstv %s1081_s9  ;;  %s1137_s13 = sld [smem:[#allocation2 + $0x15]] }
  0x23   :  { %v776_v54 = vmul.f32 -1.442695, %v1116_v46  ;;  %v176_v55 = vmul.f32 %v1007_v1, %v175_v53  ;;  %v179_v57 = vstv %s1094_s12  ;;  %s1142_s14 = sld [smem:[#allocation2 + $0x2f]] }
  0x24   :  { %900 = vrcp.f32 %v1125_v50  ;;  %v147_v58 = vmul.f32 %v146_v47, %v144_v51  ;;  %s1144_s20 = sld [smem:[#allocation2 + $0xc]]  ;;  %v56_v62 = vand.u32 2147483647, %v1125_v50  ;;  %v58_v63 = vand.u32 2147483648, %v1125_v50 }
  0x25   :  { %902 = vpow2.f32 %v776_v54  ;;  %v177_v59 = vadd.f32 %v176_v55, %v173_v52  ;;  %s1149_s24 = sld [smem:[#allocation2 + $0xd]]  ;;  %v182_v7 = vstv %s1106_s0  ;;  %v185_v11 = vstv %s1109_s18 }
  0x26   :  { %v899_v61 = vpop.eup %898  ;;  %v208_v2 = vstv %s1111_s1  ;;  %v1153_v4 = vadd.f32 %v149_v56, %v147_v58  ;;  %s1162_s25 = sld [smem:[#allocation2 + $0x3f]]  ;;  %vm52_vm0 = vweird.f32 %v1125_v50  ;;  %vm1181_vm1 = vcmp.eq.f32.partialorder %v56_v62, 8.507059e+37 }
  0x27   :  { %v1151_v3 = vadd.f32 1.0, %v899_v61  ;;  %v180_v5 = vadd.f32 %v179_v57, %v177_v59  ;;  %v209_v8 = vmul.f32 %v208_v2, %v1002_v0  ;;  %v211_v10 = vstv %s1120_s19  ;;  %s1177_s29 = sld [smem:[#allocation2 + $0x16]] }
  0x28   :  { %v782_v15 = vmul.f32 -1.442695, %v1153_v4  ;;  %v212_v19 = vmul.f32 %v1007_v1, %v211_v10  ;;  %v59_v24 = vor.u32 1.1754944e-38, %v58_v63  ;;  %v215_v26 = vstv %s1137_s13  ;;  %s1187_s15 = sld [smem:[#allocation2 + $0x30]] }
  0x29   :  { %904 = vrcp.f32 %v1151_v3  ;;  %v183_v17 = vmul.f32 %v182_v7, %v180_v5  ;;  %v92_v25 = vand.u32 2147483647, %v1151_v3  ;;  %s1193_s30 = sld [smem:[#allocation2 + $0x40]]  ;;  %vm88_vm3 = vweird.f32 %v1151_v3 }
  0x2a   :  { %v1170_v14 = vpop.eup %900  ;;  %906 = vpow2.f32 %v782_v15  ;;  %v213_v31 = vadd.f32 %v212_v19, %v209_v8  ;;  %v244_v35 = vstv %s1144_s20  ;;  %s1198_s6 = sld [smem:[#allocation2 + $0xe]]  ;;  %v94_v38 = vand.u32 2147483648, %v1151_v3 }
  0x2b   :  { %v903_v21 = vpop.eup %902  ;;  %v48_v22 = vmul.f32 %v1170_v14, %v1125_v50  ;;  %v1191_v29 = vadd.f32 %v185_v11, %v183_v17  ;;  %vm53_vm2 = vweird.f32 %v1170_v14  ;;  %v218_v39 = vstv %s1142_s14  ;;  %s1204_s7 = sld [smem:[#allocation2 + $0xf]] }
  0x2c   :  { %v1189_v27 = vadd.f32 1.0, %v903_v21  ;;  %v247_v40 = vstv %s1149_s24  ;;  %v216_v45 = vadd.f32 %v215_v26, %v213_v31  ;;  %v245_v47 = vmul.f32 %v244_v35, %v1002_v0  ;;  %vm1215_vm4 = vmor %vm52_vm0, %vm53_vm2  ;;  %s1244_s10 = sld [smem:[#allocation2 + $0x17]] }
  0x2d   :  { %1839 = sst [smem:[#allocation5_spill]] %s1177_s29  ;;  %v49_v34 = vsub.f32 1.0, %v48_v22  ;;  %v788_v44 = vmul.f32 -1.442695, %v1191_v29  ;;  %vm1220_vm5 = vcmp.eq.f32.partialorder %v92_v25, 8.507059e+37  ;;  %v221_v55 = vstv %s1162_s25 }
  0x2e   :  { %908 = vrcp.f32 %v1189_v27  ;;  %v128_v54 = vand.u32 2147483647, %v1189_v27  ;;  %v219_v58 = vmul.f32 %v218_v39, %v216_v45  ;;  %v248_v50 = vmul.f32 %v1007_v1, %v247_v40  ;;  %s1256_s11 = sld [smem:[#allocation2 + $0x31]] }
  0x2f   :  { %v905_v41 = vpop.eup %904  ;;  %v50_v43 = vmul.f32 %v1170_v14, %v49_v34  ;;  %910 = vpow2.f32 %v788_v44  ;;  %v95_v61 = vor.u32 1.1754944e-38, %v94_v38  ;;  %vm124_vm7 = vweird.f32 %v1189_v27  ;;  %s1262_s16 = sld [smem:[#allocation2 + $0x41]] }
  0x30   :  { %1842 = sst [smem:[#allocation6_spill]] %s1198_s6  ;;  %v84_v51 = vmul.f32 %v905_v41, %v1151_v3  ;;  %v907_v59 = vpop.eup %906  ;;  %vm89_vm6 = vweird.f32 %v905_v41  ;;  %v1236_v5 = vadd.f32 %v221_v55, %v219_v58  ;;  %v249_v7 = vadd.f32 %v248_v50, %v245_v47 }
  0x31   :  { %1843 = sst [smem:[#allocation7_spill]] %s1204_s7  ;;  %v51_v56 = vadd.f32 %v1170_v14, %v50_v43  ;;  %v1234_v63 = vadd.f32 1.0, %v907_v59  ;;  %vm1238_vm8 = vcmp.eq.f32.partialorder %v128_v54, 8.507059e+37  ;;  %v130_v17 = vand.u32 2147483648, %v1189_v27  ;;  %vm1248_vm9 = vmor %vm88_vm3, %vm89_vm6 }
  0x32   :  { %v85_v60 = vsub.f32 1.0, %v84_v51  ;;  %v251_v19 = vstv %s1177_s29  ;;  %1850 = sst [smem:[#allocation8_spill]] %s1244_s10  ;;  %v254_v22 = vstv %s1187_s15  ;;  %v257_v25 = vstv %s1193_s30 }
  0x33   :  { %v55_v62 = vsel %vm1215_vm4, %v1170_v14, %v51_v56  ;;  %912 = vrcp.f32 %v1234_v63  ;;  %v280_v38 = vstv %s1198_s6  ;;  %v283_v39 = vstv %s1204_s7  ;;  %s1267_s17 = sld [smem:[#allocation2 + $0x18]] }
  0x34   :  { %v909_v8 = vpop.eup %908  ;;  %v86_v11 = vmul.f32 %v905_v41, %v85_v60  ;;  %v60_v31 = vsel %vm1181_vm1, %v59_v24, %v55_v62  ;;  %v794_v44 = vmul.f32 -1.442695, %v1236_v5  ;;  %v252_v45 = vadd.f32 %v251_v19, %v249_v7  ;;  %s1275_s0 = sld [smem:[#allocation2 + $0x19]] }
  0x35   :  { %v120_v21 = vmul.f32 %v909_v8, %v1189_v27  ;;  %v911_v3 = vpop.eup %910  ;;  %vm125_vm10 = vweird.f32 %v909_v8  ;;  %v164_v6 = vand.u32 2147483647, %v1234_v63  ;;  %v166_v24 = vand.u32 2147483648, %v1234_v63  ;;  %s1305_s18 = sld [smem:[#allocation2 + $0x1a]] }
  0x36   :  { %v87_v34 = vadd.f32 %v905_v41, %v86_v11  ;;  %v1273_v49 = vadd.f32 1.0, %v911_v3  ;;  %914 = vpow2.f32 %v794_v44  ;;  %v255_v54 = vmul.f32 %v254_v22, %v252_v45  ;;  %vm1288_vm11 = vmor %vm124_vm7, %vm125_vm10  ;;  %s1320_s14 = sld [smem:[#allocation2 + $0x1b]] }
  0x37   :  { %v121_v43 = vsub.f32 1.0, %v120_v21  ;;  %v281_v55 = vmul.f32 %v280_v38, %v1002_v0  ;;  %v1281_v56 = vmul.f32 %v60_v31, %v1051_v18  ;;  %v131_v50 = vor.u32 1.1754944e-38, %v130_v17  ;;  %s1326_s25 = sld [smem:[#allocation2 + $0x1c]] }
  0x38   :  { %v91_v47 = vsel %vm1248_vm9, %v905_v41, %v87_v34  ;;  %916 = vrcp.f32 %v1273_v49  ;;  %vm160_vm12 = vweird.f32 %v1234_v63  ;;  %v1294_v0 = vadd.f32 %v257_v25, %v255_v54  ;;  %s1340_s15 = sld [smem:[#allocation2 + $0x1d]] }
  0x39   :  { %1853 = sst [smem:[#allocation9_spill]] %s1267_s17  ;;  %v122_v51 = vmul.f32 %v909_v8, %v121_v43  ;;  %v96_v41 = vsel %vm1220_vm5, %v95_v61, %v91_v47  ;;  %v913_v59 = vpop.eup %912  ;;  %v284_v18 = vmul.f32 %v1007_v1, %v283_v39  ;;  %vm1300_vm13 = vcmp.eq.f32.partialorder %v164_v6, 8.507059e+37 }
  0x3a   :  { %1854 = sst [smem:[#allocation10_spill]] %s1275_s0  ;;  %v156_v52 = vmul.f32 %v913_v59, %v1234_v63  ;;  %v167_v61 = vor.u32 1.1754944e-38, %v166_v24  ;;  %v287_v62 = vstv %s1244_s10  ;;  %v1308_v7 = vmul.f32 %v96_v41, %v1077_v30 }
  0x3b   :  { %v123_v60 = vadd.f32 %v909_v8, %v122_v51  ;;  %1859 = sst [smem:[#allocation11_spill]] %s1305_s18  ;;  %v800_v1 = vmul.f32 -1.442695, %v1294_v0  ;;  %v285_v17 = vadd.f32 %v284_v18, %v281_v55  ;;  %vm161_vm14 = vweird.f32 %v913_v59 }
  0x3c   :  { %v157_v21 = vsub.f32 1.0, %v156_v52  ;;  %v290_v22 = vstv %s1256_s11  ;;  %v915_v25 = vpop.eup %914  ;;  %vm196_vm15 = vweird.f32 %v1273_v49  ;;  %v316_v31 = vstv %s1267_s17  ;;  %1860 = sst [smem:[#allocation12_spill]] %s1320_s14  ;;  %vm1334_vm0 = vmor %vm160_vm12, %vm161_vm14 }
  0x3d   :  { %v127_v11 = vsel %vm1288_vm11, %v909_v8, %v123_v60  ;;  %918 = vpow2.f32 %v800_v1  ;;  %v288_v30 = vadd.f32 %v287_v62, %v285_v17  ;;  %v1322_v3 = vadd.f32 1.0, %v915_v25  ;;  %1861 = sst [smem:[#allocation13_spill]] %s1326_s25 }
  0x3e   :  { %v132_v14 = vsel %vm1238_vm8, %v131_v50, %v127_v11  ;;  %v917_v8 = vpop.eup %916  ;;  %v158_v34 = vmul.f32 %v913_v59, %v157_v21  ;;  %v293_v15 = vstv %s1262_s16  ;;  %v319_v43 = vstv %s1275_s0  ;;  %s1349_s30 = sld [smem:[#allocation2 + $0x1e]] }
  0x3f   :  { %v1329_v44 = vmul.f32 %v132_v14, %v1116_v46  ;;  %v192_v47 = vmul.f32 %v917_v8, %v1273_v49  ;;  %v202_v6 = vand.u32 2147483648, %v1273_v49  ;;  %v291_v24 = vmul.f32 %v290_v22, %v288_v30  ;;  %s1354_s11 = sld [smem:[#allocation2 + $0x20]] }
  0x40   :  { %v159_v51 = vadd.f32 %v913_v59, %v158_v34  ;;  %920 = vrcp.f32 %v1322_v3  ;;  %v317_v46 = vmul.f32 %v316_v31, %v1281_v56  ;;  %v320_v63 = vmul.f32 %v319_v43, %v1308_v7  ;;  %s1361_s16 = sld [smem:[#allocation2 + $0x21]] }
  0x41   :  { %v193_v54 = vsub.f32 1.0, %v192_v47  ;;  %vm197_vm1 = vweird.f32 %v917_v8  ;;  %v200_v55 = vand.u32 2147483647, %v1273_v49  ;;  %v1352_v41 = vadd.f32 %v293_v15, %v291_v24  ;;  %s1366_s0 = sld [smem:[#allocation2 + $0x1f]] }
  0x42   :  { %v163_v58 = vsel %vm1334_vm0, %v913_v59, %v159_v51  ;;  %v236_v50 = vand.u32 2147483647, %v1322_v3  ;;  %v238_v60 = vand.u32 2147483648, %v1322_v3  ;;  %v1833_v18 = vstv %s1305_s18  ;;  %vm1374_vm2 = vmor %vm196_vm15, %vm197_vm1  ;;  %s1383_s17 = sld [smem:[#allocation2 + $0x22]] }
  0x43   :  { %v919_v52 = vpop.eup %918  ;;  %v168_v11 = vsel %vm1300_vm13, %v167_v61, %v163_v58  ;;  %v194_v1 = vmul.f32 %v917_v8, %v193_v54  ;;  %v203_v17 = vor.u32 1.1754944e-38, %v202_v6  ;;  %v806_v14 = vmul.f32 -1.442695, %v1352_v41  ;;  %s1386_s10 = sld [smem:[#allocation2 + $0x23]] }
  0x44   :  { %v1369_v59 = vmul.f32 %v168_v11, %v1153_v4  ;;  %v1378_v22 = vadd.f32 1.0, %v919_v52  ;;  %v321_v27 = vadd.f32 %v320_v63, %v317_v46  ;;  %v324_v61 = vmul.f32 %v1833_v18, %v1329_v44  ;;  %s1403_s18 = sld [smem:[#allocation2 + $0x28]] }
  0x45   :  { %1864 = sst [smem:[#allocation14_spill]] %s1354_s11  ;;  %v195_v25 = vadd.f32 %v917_v8, %v194_v1  ;;  %vm201_vm3 = vcmp.eq.f32.partialorder %v200_v55, 8.507059e+37  ;;  %922 = vpow2.f32 %v806_v14  ;;  %v1832_v4 = vstv %s1320_s14 }
  0x46   :  { %1865 = sst [smem:[#allocation15_spill]] %s1361_s16  ;;  %v921_v49 = vpop.eup %920  ;;  %vm232_vm4 = vweird.f32 %v1322_v3  ;;  %vm1389_vm5 = vcmp.eq.f32.partialorder %v236_v50, 8.507059e+37  ;;  %v239_v34 = vor.u32 1.1754944e-38, %v238_v60  ;;  %924 = vrcp.f32 %v1378_v22 }
  0x47   :  { %v199_v15 = vsel %vm1374_vm2, %v917_v8, %v195_v25  ;;  %v228_v45 = vmul.f32 %v921_v49, %v1322_v3  ;;  %v272_v47 = vand.u32 2147483647, %v1378_v22  ;;  %v274_v6 = vand.u32 2147483648, %v1378_v22  ;;  %s1407_s29 = sld [smem:[#allocation2 + $0x24]] }
  0x48   :  { %1868 = sst [smem:[#allocation16_spill]] %s1383_s17  ;;  %v204_v24 = vsel %vm201_vm3, %v203_v17, %v199_v15  ;;  %v325_v51 = vadd.f32 %v324_v61, %v321_v27  ;;  %v328_v46 = vmul.f32 %v1832_v4, %v1369_v59  ;;  %v1831_v63 = vstv %s1326_s25 }
  0x49   :  { %1869 = sst [smem:[#allocation17_spill]] %s1386_s10  ;;  %v206_v8 = vmul.f32 %v204_v24, %v1191_v29  ;;  %v229_v54 = vsub.f32 1.0, %v228_v45  ;;  %vm233_vm6 = vweird.f32 %v921_v49  ;;  %v335_v55 = vstv %s1340_s15 }
  0x4a   :  { %vm268_vm7 = vweird.f32 %v1378_v22  ;;  %v339_v58 = vstv %s1349_s30  ;;  %v355_v50 = vstv %s1354_s11  ;;  %v358_v60 = vstv %s1361_s16  ;;  %s1413_s14 = sld [smem:[#allocation2 + $0x25]]  ;;  %vm1430_vm9 = vmor %vm232_vm4, %vm233_vm6 }
  0x4b   :  { %v923_v52 = vpop.eup %922  ;;  %v230_v11 = vmul.f32 %v921_v49, %v229_v54  ;;  %vm1415_vm8 = vcmp.eq.f32.partialorder %v272_v47, 8.507059e+37  ;;  %v275_v1 = vor.u32 1.1754944e-38, %v274_v6  ;;  %v356_v17 = vmul.f32 %v355_v50, %v1281_v56  ;;  %s1425_s7 = sld [smem:[#allocation2 + $0x26]] }
  0x4c   :  { %v359_v14 = vmul.f32 %v358_v60, %v1308_v7  ;;  %v925_v21 = vpop.eup %924  ;;  %v1434_v61 = vadd.f32 1.0, %v923_v52  ;;  %v329_v25 = vadd.f32 %v328_v46, %v325_v51  ;;  %v343_v15 = vstv %s1366_s0  ;;  %s1438_s11 = sld [smem:[#allocation2 + $0x32]] }
  0x4d   :  { %v362_v45 = vstv %s1383_s17  ;;  %v231_v56 = vadd.f32 %v921_v49, %v230_v11  ;;  %v264_v7 = vmul.f32 %v925_v21, %v1378_v22  ;;  %v332_v47 = vmul.f32 %v1831_v63, %v206_v8  ;;  %s1444_s16 = sld [smem:[#allocation2 + $0x42]] }
  0x4e   :  { %v366_v3 = vstv %s1386_s10  ;;  %vm269_vm10 = vweird.f32 %v925_v21  ;;  %926 = vrcp.f32 %v1434_v61  ;;  %v308_v6 = vand.u32 2147483647, %v1434_v61  ;;  %s1454_s25 = sld [smem:[#allocation2 + $0x33]] }
  0x4f   :  { %v310_v24 = vand.u32 2147483648, %v1434_v61  ;;  %v235_v51 = vsel %vm1430_vm9, %v921_v49, %v231_v56  ;;  %v265_v46 = vsub.f32 1.0, %v264_v7  ;;  %v360_v54 = vadd.f32 %v359_v14, %v356_v17  ;;  %s1462_s6 = sld [smem:[#allocation2 + $0x27]]  ;;  %vm1471_vm11 = vmor %vm268_vm7, %vm269_vm10 }
  0x50   :  { %v363_v52 = vmul.f32 %v362_v45, %v1329_v44  ;;  %v240_v11 = vsel %vm1389_vm5, %v239_v34, %v235_v51  ;;  %v347_v63 = vstv %s1403_s18  ;;  %v349_v4 = vlaneseq  ;;  %s1466_s17 = sld [smem:[#allocation2 + $0x43]] }
  0x51   :  { %v367_v18 = vmul.f32 %v366_v3, %v1369_v59  ;;  %v242_v49 = vmul.f32 %v240_v11, %v1236_v5  ;;  %v266_v17 = vmul.f32 %v925_v21, %v265_v46  ;;  %v370_v44 = vstv %s1407_s29  ;;  %s1479_s10 = sld [smem:[#allocation2 + $0x34]] }
  0x52   :  { %v364_v14 = vadd.f32 %v363_v52, %v360_v54  ;;  %vm304_vm12 = vweird.f32 %v1434_v61  ;;  %v333_v59 = vadd.f32 %v332_v47, %v329_v25  ;;  %v371_v5 = vmul.f32 %v370_v44, %v206_v8  ;;  %s1487_s2 = sld [smem:[#allocation2 + $0x44]] }
  0x53   :  { %v374_v34 = vstv %s1413_s14  ;;  %v267_v27 = vadd.f32 %v925_v21, %v266_v17  ;;  %vm1481_vm13 = vcmp.eq.f32.partialorder %v308_v6, 8.507059e+37  ;;  %v311_v22 = vor.u32 1.1754944e-38, %v310_v24  ;;  %s1508_s21 = sld [smem:[#allocation2 + $0x35]] }
  0x54   :  { %v336_v7 = vmul.f32 %v335_v55, %v242_v49  ;;  %v368_v51 = vadd.f32 %v367_v18, %v364_v14  ;;  %v927_v46 = vpop.eup %926  ;;  %v375_v8 = vmul.f32 %v374_v34, %v242_v49  ;;  %v378_v25 = vstv %s1425_s7  ;;  %s1515_s22 = sld [smem:[#allocation2 + $0x45]] }
  0x55   :  { %v405_v47 = vstv %s1438_s11  ;;  %v432_v54 = vmul.f32 %v1086_v33, %v64_v9  ;;  %v271_v6 = vsel %vm1471_vm11, %v925_v21, %v267_v27  ;;  %v300_v24 = vmul.f32 %v927_v46, %v1434_v61  ;;  %s1532_s26 = sld [smem:[#allocation2 + $0x29]] }
  0x56   :  { %vm305_vm14 = vweird.f32 %v927_v46  ;;  %v408_v52 = vstv %s1444_s16  ;;  %v276_v18 = vsel %vm1415_vm8, %v275_v1, %v271_v6  ;;  %v372_v11 = vadd.f32 %v371_v5, %v368_v51  ;;  %s1550_s23 = sld [smem:[#allocation2 + $0x36]] }
  0x57   :  { %v406_v49 = vmul.f32 %v405_v47, %v1168_v13  ;;  %v435_v9 = vmul.f32 %v1099_v37, %v67_v12  ;;  %v278_v21 = vmul.f32 %v276_v18, %v1294_v0  ;;  %v301_v17 = vsub.f32 1.0, %v300_v24  ;;  %vm1527_vm15 = vmor %vm304_vm12, %vm305_vm14  ;;  %s1565_s27 = sld [smem:[#allocation2 + $0x37]] }
  0x58   :  { %v337_v14 = vadd.f32 %v336_v7, %v333_v59  ;;  %v441_v30 = vstv %s1454_s25  ;;  %v376_v29 = vadd.f32 %v375_v8, %v372_v11  ;;  %v468_v13 = vmul.f32 %v1086_v33, %v100_v20  ;;  %s1579_s28 = sld [smem:[#allocation2 + $0x47]] }
  0x59   :  { %v1510_v1 = vadd.f32 %v408_v52, %v406_v49  ;;  %v436_v5 = vadd.f32 %v435_v9, %v432_v54  ;;  %v302_v12 = vmul.f32 %v927_v46, %v301_v17  ;;  %v340_v0 = vmul.f32 %v339_v58, %v278_v21  ;;  %s1602_s3 = sld [smem:[#allocation2 + $0x38]] }
  0x5a   :  { %v379_v59 = vmul.f32 %v378_v25, %v278_v21  ;;  %v471_v27 = vmul.f32 %v1099_v37, %v103_v23  ;;  %v382_v20 = vstv %s1462_s6  ;;  %v444_v47 = vstv %s1466_s17  ;;  %s1884_s8 = sld [smem:[#allocation18_spill]] }
  0x5b   :  { %v832_v51 = vmul.f32 -1.442695, %v1510_v1  ;;  %v439_v8 = vadd.f32 %v436_v5, %v71_v16  ;;  %v303_v54 = vadd.f32 %v927_v46, %v302_v12  ;;  %v477_v24 = vstv %s1479_s10  ;;  %s1625_s13 = sld [smem:[#allocation2 + $0x48]] }
  0x5c   :  { %v472_v6 = vadd.f32 %v471_v27, %v468_v13  ;;  %v480_v23 = vstv %s1487_s2  ;;  %vm1540_vm0 = vcmp.lt.s32.totalorder %v349_v4, 512  ;;  %v504_v18 = vmul.f32 %v1086_v33, %v136_v32  ;;  %s1556_s2 = sld [smem:[#allocation2 + $0x46]] }
  0x5d   :  { %928 = vpow2.f32 %v832_v51  ;;  %v442_v52 = vmul.f32 %v441_v30, %v439_v8  ;;  %v507_v16 = vmul.f32 %v1099_v37, %v139_v36  ;;  %v307_v11 = vsel %vm1527_vm15, %v927_v46, %v303_v54  ;;  %s1631_s24 = sld [smem:[#allocation2 + $0x39]] }
  0x5e   :  { %v341_v4 = vadd.f32 %v340_v0, %v337_v14  ;;  %v380_v49 = vadd.f32 %v379_v59, %v376_v29  ;;  %v475_v9 = vadd.f32 %v472_v6, %v107_v28  ;;  %v312_v32 = vsel %vm1481_vm13, %v311_v22, %v307_v11  ;;  %s1653_s10 = sld [smem:[#allocation2 + $0x49]] }
  0x5f   :  { %v1560_v36 = vadd.f32 %v444_v47, %v442_v52  ;;  %v508_v21 = vadd.f32 %v507_v16, %v504_v18  ;;  %v540_v17 = vmul.f32 %v1086_v33, %v172_v48  ;;  %v314_v46 = vmul.f32 %v312_v32, %v1352_v41 }
  0x60   :  { %v478_v14 = vmul.f32 %v477_v24, %v475_v9  ;;  %v513_v28 = vstv %s1508_s21  ;;  %v543_v30 = vmul.f32 %v1099_v37, %v175_v53  ;;  %v516_v29 = vstv %s1515_s22  ;;  %s1911_s22 = sld [smem:[#allocation11_spill]] }
  0x61   :  { %v838_v56 = vmul.f32 -1.442695, %v1560_v36  ;;  %v511_v22 = vadd.f32 %v508_v21, %v143_v42  ;;  %v576_v5 = vmul.f32 %v1086_v33, %v208_v2  ;;  %v344_v48 = vmul.f32 %v343_v15, %v314_v46 }
  0x62   :  { %v383_v41 = vmul.f32 %v382_v20, %v314_v46  ;;  %v1585_v13 = vadd.f32 %v480_v23, %v478_v14  ;;  %v544_v53 = vadd.f32 %v543_v30, %v540_v17  ;;  %v386_v42 = vstv %s1532_s26 }
  0x63   :  { %v929_v12 = vpop.eup %928  ;;  %930 = vpow2.f32 %v838_v56  ;;  %v514_v0 = vmul.f32 %v513_v28, %v511_v22  ;;  %v579_v2 = vmul.f32 %v1099_v37, %v211_v10  ;;  %v345_v59 = vadd.f32 %v344_v48, %v341_v4 }
  0x64   :  { %v384_v27 = vadd.f32 %v383_v41, %v380_v49  ;;  %v413_v7 = vadd.f32 1.0, %v929_v12  ;;  %v844_v51 = vmul.f32 -1.442695, %v1585_v13  ;;  %v547_v47 = vadd.f32 %v544_v53, %v179_v57 }
  0x65   :  { %v1592_v8 = vadd.f32 %v516_v29, %v514_v0  ;;  %v549_v54 = vstv %s1550_s23  ;;  %v580_v6 = vadd.f32 %v579_v2, %v576_v5  ;;  %v348_v24 = vadd.f32 %v347_v63, %v345_v59 }
  0x66   :  { %v387_v23 = vadd.f32 %v386_v42, %v384_v27  ;;  %932 = vrcp.f32 %v413_v7  ;;  %v552_v10 = vstv %s1556_s2  ;;  %v423_v52 = vand.u32 2147483647, %v413_v7  ;;  %s1916_s2 = sld [smem:[#allocation12_spill]] }
  0x67   :  { %934 = vpow2.f32 %v844_v51  ;;  %v850_v18 = vmul.f32 -1.442695, %v1592_v8  ;;  %v585_v16 = vstv %s1565_s27  ;;  %353 = vst.msk [vmem:[%s1884_s8] ss:$4 sm:$0xf] %vm1540_vm0, %v348_v24  ;;  %v550_v57 = vmul.f32 %v549_v54, %v547_v47 }
  0x68   :  { %v583_v11 = vadd.f32 %v580_v6, %v215_v26  ;;  %v612_v4 = vmul.f32 %v1086_v33, %v244_v35  ;;  %v615_v49 = vmul.f32 %v1099_v37, %v247_v40  ;;  %825 = vst.msk [vmem:[%s1884_s8 + $0x1] ss:$4 sm:$0xf] %vm1540_vm0, %v387_v23  ;;  %v425_v32 = vand.u32 2147483648, %v413_v7 }
  0x69   :  { %v931_v9 = vpop.eup %930  ;;  %936 = vpow2.f32 %v850_v18  ;;  %v588_v21 = vstv %s1579_s28  ;;  %v1629_v35 = vadd.f32 %v552_v10, %v550_v57  ;;  %vm419_vm1 = vweird.f32 %v413_v7  ;;  %s1918_s28 = sld [smem:[#allocation13_spill]] }
  0x6a   :  { %v1627_v26 = vadd.f32 1.0, %v931_v9  ;;  %v586_v17 = vmul.f32 %v585_v16, %v583_v11  ;;  %v616_v40 = vadd.f32 %v615_v49, %v612_v4  ;;  %vm1633_vm2 = vcmp.eq.f32.partialorder %v423_v52, 8.507059e+37 }
  0x6b   :  { %v648_v28 = vmul.f32 %v1086_v33, %v280_v38  ;;  %v651_v30 = vmul.f32 %v1099_v37, %v283_v39  ;;  %v426_v29 = vor.u32 1.1754944e-38, %v425_v32  ;;  %v856_v5 = vmul.f32 -1.442695, %v1629_v35 }
  0x6c   :  { %v933_v46 = vpop.eup %932  ;;  %938 = vrcp.f32 %v1627_v26  ;;  %v1645_v48 = vadd.f32 %v588_v21, %v586_v17  ;;  %v459_v41 = vand.u32 2147483647, %v1627_v26  ;;  %v619_v12 = vadd.f32 %v616_v40, %v251_v19 }
  0x6d   :  { %v935_v56 = vpop.eup %934  ;;  %v415_v22 = vmul.f32 %v933_v46, %v413_v7  ;;  %v621_v0 = vstv %s1602_s3  ;;  %vm420_vm3 = vweird.f32 %v933_v46  ;;  %940 = vpow2.f32 %v856_v5 }
  0x6e   :  { %v1648_v53 = vadd.f32 1.0, %v935_v56  ;;  %v862_v37 = vmul.f32 -1.442695, %v1645_v48  ;;  %v461_v39 = vand.u32 2147483648, %v1627_v26  ;;  %v652_v59 = vadd.f32 %v651_v30, %v648_v28  ;;  %vm1662_vm4 = vmor %vm419_vm1, %vm420_vm3 }
  0x6f   :  { %v937_v33 = vpop.eup %936  ;;  %v416_v38 = vsub.f32 1.0, %v415_v22  ;;  %v622_v51 = vmul.f32 %v621_v0, %v619_v12  ;;  %vm455_vm5 = vweird.f32 %v1627_v26  ;;  %v624_v24 = vstv %s1625_s13 }
  0x70   :  { %942 = vrcp.f32 %v1648_v53  ;;  %v495_v2 = vand.u32 2147483647, %v1648_v53  ;;  %v1659_v19 = vadd.f32 1.0, %v937_v33  ;;  %v497_v6 = vand.u32 2147483648, %v1648_v53 }
  0x71   :  { %v417_v27 = vmul.f32 %v933_v46, %v416_v38  ;;  %944 = vpow2.f32 %v862_v37  ;;  %v657_v23 = vstv %s1631_s24  ;;  %vm1671_vm6 = vcmp.eq.f32.partialorder %v459_v41, 8.507059e+37 }
  0x72   :  { %v939_v47 = vpop.eup %938  ;;  %946 = vrcp.f32 %v1659_v19  ;;  %v462_v7 = vor.u32 1.1754944e-38, %v461_v39  ;;  %vm491_vm7 = vweird.f32 %v1648_v53  ;;  %v531_v16 = vand.u32 2147483647, %v1659_v19 }
  0x73   :  { %v418_v10 = vadd.f32 %v933_v46, %v417_v27  ;;  %v451_v52 = vmul.f32 %v939_v47, %v1627_v26  ;;  %v655_v57 = vadd.f32 %v652_v59, %v287_v62  ;;  %v941_v11 = vpop.eup %940  ;;  %vm456_vm8 = vweird.f32 %v939_v47 }
  0x74   :  { %vm1682_vm9 = vcmp.eq.f32.partialorder %v495_v2, 8.507059e+37  ;;  %v1686_v32 = vadd.f32 %v624_v24, %v622_v51  ;;  %v498_v17 = vor.u32 1.1754944e-38, %v497_v6  ;;  %vm527_vm10 = vweird.f32 %v1659_v19  ;;  %vm1696_vm11 = vmor %vm455_vm5, %vm456_vm8 }
  0x75   :  { %v422_v4 = vsel %vm1662_vm4, %v933_v46, %v418_v10  ;;  %v452_v49 = vsub.f32 1.0, %v451_v52  ;;  %v557_v40 = vadd.f32 1.0, %v941_v11  ;;  %v660_v28 = vstv %s1653_s10 }
  0x76   :  { %v943_v21 = vpop.eup %942  ;;  %v427_v62 = vsel %vm1633_vm2, %v426_v29, %v422_v4  ;;  %v533_v22 = vand.u32 2147483648, %v1659_v19  ;;  %vm1700_vm13 = vcmp.eq.f32.partialorder %v531_v16, 8.507059e+37  ;;  %v658_v12 = vmul.f32 %v657_v23, %v655_v57 }
  0x77   :  { %v945_v30 = vpop.eup %944  ;;  %v453_v56 = vmul.f32 %v939_v47, %v452_v49  ;;  %v487_v46 = vmul.f32 %v943_v21, %v1648_v53  ;;  %vm492_vm12 = vweird.f32 %v943_v21  ;;  %948 = vrcp.f32 %v557_v40 }
  0x78   :  { %v947_v14 = vpop.eup %946  ;;  %v1704_v33 = vadd.f32 1.0, %v945_v30  ;;  %v868_v38 = vmul.f32 -1.442695, %v1686_v32  ;;  %v429_v26 = vmul.f32 %v427_v62, %v1510_v1  ;;  %v567_v39 = vand.u32 2147483647, %v557_v40  ;;  %vm1717_vm14 = vmor %vm491_vm7, %vm492_vm12 }
  0x79   :  { %v454_v29 = vadd.f32 %v939_v47, %v453_v56  ;;  %v488_v0 = vsub.f32 1.0, %v487_v46  ;;  %v523_v37 = vmul.f32 %v947_v14, %v1659_v19  ;;  %v569_v2 = vand.u32 2147483648, %v557_v40 }
  0x7a   :  { %v534_v51 = vor.u32 1.1754944e-38, %v533_v22  ;;  %950 = vrcp.f32 %v1704_v33  ;;  %vm528_vm15 = vweird.f32 %v947_v14  ;;  %vm563_vm1 = vweird.f32 %v557_v40 }
  0x7b   :  { %v458_v59 = vsel %vm1696_vm11, %v939_v47, %v454_v29  ;;  %v489_v27 = vmul.f32 %v943_v21, %v488_v0  ;;  %v524_v6 = vsub.f32 1.0, %v523_v37  ;;  %952 = vpow2.f32 %v868_v38  ;;  %vm1734_vm3 = vmor %vm527_vm10, %vm528_vm15 }
  0x7c   :  { %v463_v54 = vsel %vm1671_vm6, %v462_v7, %v458_v59  ;;  %v1722_v23 = vadd.f32 %v660_v28, %v658_v12  ;;  %vm1724_vm2 = vcmp.eq.f32.partialorder %v567_v39, 8.507059e+37  ;;  %v570_v53 = vor.u32 1.1754944e-38, %v569_v2 }
  0x7d   :  { %v465_v47 = vmul.f32 %v463_v54, %v1560_v36  ;;  %v490_v24 = vadd.f32 %v943_v21, %v489_v27  ;;  %v949_v10 = vpop.eup %948  ;;  %v525_v52 = vmul.f32 %v947_v14, %v524_v6  ;;  %v684_v7 = vmul.f32 %v429_v26, %v316_v31 }
  0x7e   :  { %v559_v57 = vmul.f32 %v949_v10, %v557_v40  ;;  %vm564_vm4 = vweird.f32 %v949_v10  ;;  %v874_v11 = vmul.f32 -1.442695, %v1722_v23  ;;  %v720_v31 = vmul.f32 %v429_v26, %v355_v50 }
  0x7f   :  { %v494_v16 = vsel %vm1717_vm14, %v943_v21, %v490_v24  ;;  %v526_v49 = vadd.f32 %v947_v14, %v525_v52  ;;  %v687_v28 = vmul.f32 %v465_v47, %v319_v43  ;;  %v723_v62 = vmul.f32 %v465_v47, %v358_v60  ;;  %vm1758_vm7 = vmor %vm563_vm1, %vm564_vm4 }
  0x80   :  { %v499_v4 = vsel %vm1682_vm9, %v498_v17, %v494_v16  ;;  %v951_v30 = vpop.eup %950  ;;  %v560_v19 = vsub.f32 1.0, %v559_v57  ;;  %954 = vpow2.f32 %v874_v11  ;;  %vm599_vm5 = vweird.f32 %v1704_v33 }
  0x81   :  { %v501_v21 = vmul.f32 %v499_v4, %v1585_v13  ;;  %v530_v56 = vsel %vm1734_vm3, %v947_v14, %v526_v49  ;;  %v595_v46 = vmul.f32 %v951_v30, %v1704_v33  ;;  %v603_v43 = vand.u32 2147483647, %v1704_v33  ;;  %v953_v9 = vpop.eup %952 }
  0x82   :  { %v535_v50 = vsel %vm1700_vm13, %v534_v51, %v530_v56  ;;  %v561_v13 = vmul.f32 %v949_v10, %v560_v19  ;;  %vm600_vm6 = vweird.f32 %v951_v30  ;;  %v605_v17 = vand.u32 2147483648, %v1704_v33 }
  0x83   :  { %v596_v22 = vsub.f32 1.0, %v595_v46  ;;  %v629_v5 = vadd.f32 1.0, %v953_v9  ;;  %v688_v12 = vadd.f32 %v687_v28, %v684_v7  ;;  %v1915_v14 = vstv %s1911_s22  ;;  %vm601_vm8 = vmor %vm599_vm5, %vm600_vm6 }
  0x84   :  { %v691_v29 = vmul.f32 %v501_v21, %v1915_v14  ;;  %v537_v0 = vmul.f32 %v535_v50, %v1592_v8  ;;  %v562_v41 = vadd.f32 %v949_v10, %v561_v13  ;;  %v724_v38 = vadd.f32 %v723_v62, %v720_v31 }
  0x85   :  { %v727_v26 = vmul.f32 %v501_v21, %v362_v45  ;;  %v597_v37 = vmul.f32 %v951_v30, %v596_v22  ;;  %956 = vrcp.f32 %v629_v5  ;;  %v606_v2 = vor.u32 1.1754944e-38, %v605_v17 }
  0x86   :  { %v955_v40 = vpop.eup %954  ;;  %v566_v39 = vsel %vm1758_vm7, %v949_v10, %v562_v41  ;;  %vm604_vm9 = vcmp.eq.f32.partialorder %v603_v43, 8.507059e+37  ;;  %v692_v45 = vadd.f32 %v691_v29, %v688_v12  ;;  %v1919_v51 = vstv %s1916_s2 }
  0x87   :  { %v571_v59 = vsel %vm1724_vm2, %v570_v53, %v566_v39  ;;  %v598_v8 = vadd.f32 %v951_v30, %v597_v37  ;;  %v665_v27 = vadd.f32 1.0, %v955_v40  ;;  %v695_v54 = vmul.f32 %v537_v0, %v1919_v51 }
  0x88   :  { %v728_v1 = vadd.f32 %v727_v26, %v724_v38  ;;  %v573_v6 = vmul.f32 %v571_v59, %v1629_v35  ;;  %v731_v33 = vmul.f32 %v537_v0, %v366_v3  ;;  %v639_v52 = vand.u32 2147483647, %v629_v5 }
  0x89   :  { %v602_v47 = vsel %vm601_vm8, %v951_v30, %v598_v8  ;;  %958 = vrcp.f32 %v665_v27  ;;  %v641_v18 = vand.u32 2147483648, %v629_v5  ;;  %v696_v7 = vadd.f32 %v695_v54, %v692_v45 }
  0x8a   :  { %v607_v24 = vsel %vm604_vm9, %v606_v2, %v602_v47  ;;  %v1920_v36 = vstv %s1918_s28  ;;  %v732_v11 = vadd.f32 %v731_v33, %v728_v1  ;;  %v735_v4 = vmul.f32 %v573_v6, %v370_v44 }
  0x8b   :  { %v957_v10 = vpop.eup %956  ;;  %v609_v16 = vmul.f32 %v607_v24, %v1645_v48  ;;  %v699_v57 = vmul.f32 %v573_v6, %v1920_v36  ;;  %vm635_vm10 = vweird.f32 %v629_v5  ;;  %vm1784_vm12 = vcmp.eq.f32.partialorder %v639_v52, 8.507059e+37 }
  0x8c   :  { %v631_v53 = vmul.f32 %v957_v10, %v629_v5  ;;  %vm636_vm11 = vweird.f32 %v957_v10  ;;  %v642_v28 = vor.u32 1.1754944e-38, %v641_v18  ;;  %vm671_vm13 = vweird.f32 %v665_v27 }
  0x8d   :  { %v675_v48 = vand.u32 2147483647, %v665_v27  ;;  %vm637_vm14 = vmor %vm635_vm10, %vm636_vm11  ;;  %v677_v21 = vand.u32 2147483648, %v665_v27  ;;  %v700_v19 = vadd.f32 %v699_v57, %v696_v7  ;;  %v703_v62 = vmul.f32 %v609_v16, %v335_v55 }
  0x8e   :  { %v632_v49 = vsub.f32 1.0, %v631_v53  ;;  %v736_v44 = vadd.f32 %v735_v4, %v732_v11  ;;  %v739_v43 = vmul.f32 %v609_v16, %v374_v34 }
  0x8f   :  { %v959_v35 = vpop.eup %958  ;;  %vm676_vm2 = vcmp.eq.f32.partialorder %v675_v48, 8.507059e+37  ;;  %v678_v17 = vor.u32 1.1754944e-38, %v677_v21  ;;  %v704_v22 = vadd.f32 %v703_v62, %v700_v19 }
  0x90   :  { %v633_v31 = vmul.f32 %v957_v10, %v632_v49  ;;  %v667_v30 = vmul.f32 %v959_v35, %v665_v27  ;;  %vm672_vm15 = vweird.f32 %v959_v35  ;;  %v740_v5 = vadd.f32 %v739_v43, %v736_v44 }
  0x91   :  { %vm673_vm1 = vmor %vm671_vm13, %vm672_vm15 }
  0x92   :  { %v634_v56 = vadd.f32 %v957_v10, %v633_v31  ;;  %v668_v46 = vsub.f32 1.0, %v667_v30 }
  0x94   :  { %v638_v9 = vsel %vm637_vm14, %v957_v10, %v634_v56  ;;  %v669_v50 = vmul.f32 %v959_v35, %v668_v46 }
  0x95   :  { %v643_v13 = vsel %vm1784_vm12, %v642_v28, %v638_v9 }
  0x96   :  { %v645_v55 = vmul.f32 %v643_v13, %v1686_v32  ;;  %v670_v60 = vadd.f32 %v959_v35, %v669_v50 }
  0x98   :  { %v674_v12 = vsel %vm673_vm1, %v959_v35, %v670_v60  ;;  %v707_v34 = vmul.f32 %v645_v55, %v339_v58  ;;  %v743_v14 = vmul.f32 %v645_v55, %v378_v25 }
  0x99   :  { %v679_v29 = vsel %vm676_vm2, %v678_v17, %v674_v12 }
  0x9a   :  { %v681_v0 = vmul.f32 %v679_v29, %v1722_v23  ;;  %v708_v41 = vadd.f32 %v707_v34, %v704_v22  ;;  %v744_v38 = vadd.f32 %v743_v14, %v740_v5 }
  0x9c   :  { %v711_v26 = vmul.f32 %v681_v0, %v343_v15  ;;  %v747_v37 = vmul.f32 %v681_v0, %v382_v20 }
  0x9e   :  { %v712_v40 = vadd.f32 %v711_v26, %v708_v41  ;;  %v748_v32 = vadd.f32 %v747_v37, %v744_v38 }
  0xa0   :  { %v715_v39 = vadd.f32 %v712_v40, %v347_v63  ;;  %v751_v2 = vadd.f32 %v748_v32, %v386_v42 }
  0xa2   :  { %884 = vst.msk [vmem:[%s1884_s8 + $0x2] ss:$4 sm:$0xf] %vm1540_vm0, %v715_v39 }
  0xa3   :  { %894 = vst.msk [vmem:[%s1884_s8 + $0x3] ss:$4 sm:$0xf] %vm1540_vm0, %v751_v2 }
  0xa4   :  { %758 = vsyncpa [#allocation3], 1 }

</bundles_post_ra>
